<compile_context>
chip_gen: v7x
topology: tpu7x:2x2x1
jax: 0.10.0
libtpu: 0.0.40
codegen_flags: <defaults>
</compile_context>

<pallas_src>
import functools

import jax
import jax.numpy as jnp
from jax.experimental import pallas as pl
from jax.experimental.pallas import tpu as pltpu

LANES = 128        # TPU vreg lane width: channel dims are zero-padded to this
SUBLANES = 8       # TPU vreg sublane count: row dims are padded to this
_VMEM_LIMIT = 32 * 1024 * 1024   # fits scoped VMEM on v5e/v6e and v7x's 64 MiB


def _round_up(x, m):
    return (x + m - 1) // m * m


def _pad_axis(x, axis, target):
    if x.shape[axis] == target:
        return x
    cfg = [(0, 0)] * x.ndim
    cfg[axis] = (0, target - x.shape[axis])
    return jnp.pad(x, cfg)


# ---------------------------------------------------------------------------
# Kernel 1: implicit-GEMM Conv2d + folded BatchNorm + ReLU
# ---------------------------------------------------------------------------

def _conv_bn_relu_kernel(x_ref, w_ref, b_ref, o_ref, *,
                         kh, kw, stride, w_prime, rows_per_phase, m_tile):
    """One image: conv as kh*kw accumulating MXU dots over shifted row windows.

    x_ref: (1, s*s*rows_per_phase, Cp) f32  phase-major flattened input
    w_ref: (kh*kw, Cp, Op)             bf16 per-tap weight slabs (BN-scaled)
    b_ref: (1, Op)                     f32  folded BN bias
    o_ref: (1, m_tile, Op)             f32  flattened output (phase grid)
    """
    s = stride
    op = o_ref.shape[-1]
    acc = jnp.zeros((m_tile, op), jnp.float32)
    # Statically unrolled tap reduction: all window offsets are Python ints,
    # so every slice is a static contiguous row window (no dynamic slices).
    for t in range(kh * kw):
        ki, kj = divmod(t, kw)
        phase = (ki % s) * s + (kj % s)
        shift = (ki // s) * w_prime + (kj // s)
        start = phase * rows_per_phase + shift
        v = x_ref[0, pl.ds(start, m_tile), :].astype(jnp.bfloat16)  # (m, Cp)
        acc = acc + jnp.dot(v, w_ref[t], preferred_element_type=jnp.float32)
    # f32 epilogue: bias + ReLU, single cast at the end.
    y = jnp.maximum(acc + b_ref[...], 0.0)
    o_ref[0] = y.astype(o_ref.dtype)


def conv_bn_relu(x_nhwc, weight_oihw, gamma, beta, mean, var, stride, eps=1e-3):
    """Conv2d(bias=False, padding=0) + BatchNorm(eval) + ReLU, PyTorch semantics.

    x_nhwc may carry zero-padded channels (>= weight's in-channels).  Returns
    NHWC output with the channel dim zero-padded to a multiple of 128 lanes.
    """
    b, h, w, cin_x = x_nhwc.shape
    o, i, kh, kw = weight_oihw.shape
    assert cin_x >= i
    s = stride
    oh = (h - kh) // s + 1
    ow = (w - kw) // s + 1

    cp = _round_up(cin_x, LANES)      # lane-dense contraction dim
    op = _round_up(o, LANES)          # lane-dense output-channel dim

    # --- fold BatchNorm into conv weights / bias ----------------------------
    scale = gamma / jnp.sqrt(var + eps)                    # (O,)
    bias = beta - mean * scale                             # (O,)
    wk = jnp.transpose(weight_oihw, (2, 3, 1, 0))          # (kh, kw, I, O)
    wk = wk * scale[None, None, None, :]
    wk = wk.reshape(kh * kw, i, o)
    wk = _pad_axis(_pad_axis(wk, 1, cp), 2, op).astype(jnp.bfloat16)
    bias_p = _pad_axis(bias.reshape(1, o), 1, op).astype(jnp.float32)

    # --- phase-decompose input so every tap is a contiguous row window ------
    # (pure permutation: 1x HBM traffic, no 9x im2col expansion)
    xp = _pad_axis(x_nhwc.astype(jnp.float32), 3, cp)
    hp, wp = _round_up(h, s), _round_up(w, s)
    xp = _pad_axis(_pad_axis(xp, 1, hp), 2, wp)
    h2, w2 = hp // s, wp // s
    x_ph = xp.reshape(b, h2, s, w2, s, cp).transpose(0, 2, 4, 1, 3, 5)
    x_ph = x_ph.reshape(b, s * s, h2 * w2, cp)

    m_tile = _round_up(h2 * w2, SUBLANES)                  # GEMM M (phase grid)
    d_max = ((kh - 1) // s) * w2 + (kw - 1) // s           # max tap row shift
    rows_per_phase = _round_up(m_tile + d_max, SUBLANES)
    x_ph = _pad_axis(x_ph, 2, rows_per_phase)
    x_ph = x_ph.reshape(b, s * s * rows_per_phase, cp)

    num_taps = kh * kw
    flops = 2 * b * m_tile * cp * op * num_taps
    bytes_accessed = (x_ph.size * 4 + wk.size * 2 + bias_p.size * 4
                      + b * m_tile * op * 4)

    kernel = functools.partial(
        _conv_bn_relu_kernel, kh=kh, kw=kw, stride=s, w_prime=w2,
        rows_per_phase=rows_per_phase, m_tile=m_tile)

    out = pl.pallas_call(
        kernel,
        out_shape=jax.ShapeDtypeStruct((b, m_tile, op), jnp.float32),
        grid=(b,),
        in_specs=[
            pl.BlockSpec((1, s * s * rows_per_phase, cp), lambda bb: (bb, 0, 0)),
            pl.BlockSpec((num_taps, cp, op), lambda bb: (0, 0, 0)),
            pl.BlockSpec((1, op), lambda bb: (0, 0)),
        ],
        out_specs=pl.BlockSpec((1, m_tile, op), lambda bb: (bb, 0, 0)),
        compiler_params=pltpu.CompilerParams(
            dimension_semantics=("parallel",),          # megacore split on v7x
            vmem_limit_bytes=_VMEM_LIMIT),
        cost_estimate=pl.CostEstimate(
            flops=flops, transcendentals=0, bytes_accessed=bytes_accessed),
    )(x_ph, wk, bias_p)

    # crop the phase grid back to the valid (oh, ow) output window
    out = out[:, :h2 * w2, :].reshape(b, h2, w2, op)[:, :oh, :ow, :]
    return out


# ---------------------------------------------------------------------------
# Kernel 2: fused global-average-pool + fc + Dropout(Identity) + Sigmoid
# ---------------------------------------------------------------------------

def _gap_fc_sigmoid_kernel(x_ref, w_ref, b_ref, o_ref, acc_ref, *, inv_count):
    """Grid axis 0 walks HW tiles ("arbitrary" reduction).

    x_ref: (B, t_hw, Cp) f32 | w_ref: (Cp, Np) bf16 | b_ref: (1, Np) f32
    o_ref: (B, Np) f32       | acc_ref: (B, Cp) f32 VMEM scratch accumulator
    """
    j = pl.program_id(0)

    @pl.when(j == 0)
    def _init():
        acc_ref[...] = jnp.zeros_like(acc_ref)

    acc_ref[...] += jnp.sum(x_ref[...].astype(jnp.float32), axis=1)

    @pl.when(j == pl.num_programs(0) - 1)
    def _finalize():
        feats = (acc_ref[...] * inv_count).astype(jnp.bfloat16)       # (B, Cp)
        y = jnp.dot(feats, w_ref[...], preferred_element_type=jnp.float32)
        y = y + b_ref[...]
        # sigmoid: exp + approximate reciprocal both ride the EUP slot.
        p = pl.reciprocal(1.0 + jnp.exp(-y), approx=True)
        o_ref[...] = jnp.clip(p, 0.0, 1.0)


def gap_fc_sigmoid(x_bhwc, fc_w, fc_b):
    b, oh, ow, cp = x_bhwc.shape
    n_out = fc_w.shape[1]
    hw = oh * ow
    t_hw = SUBLANES
    hw_pad = _round_up(hw, t_hw)
    n_tiles = hw_pad // t_hw
    n_out_p = _round_up(n_out, LANES)          # lane-dense fc output

    x2 = _pad_axis(x_bhwc.reshape(b, hw, cp).astype(jnp.float32), 1, hw_pad)
    w_p = _pad_axis(_pad_axis(fc_w, 0, cp), 1, n_out_p).astype(jnp.bfloat16)
    b_p = _pad_axis(fc_b.reshape(1, n_out), 1, n_out_p).astype(jnp.float32)

    kernel = functools.partial(_gap_fc_sigmoid_kernel, inv_count=1.0 / hw)
    out = pl.pallas_call(
        kernel,
        out_shape=jax.ShapeDtypeStruct((b, n_out_p), jnp.float32),
        grid=(n_tiles,),
        in_specs=[
            pl.BlockSpec((b, t_hw, cp), lambda j: (0, j, 0)),
            pl.BlockSpec((cp, n_out_p), lambda j: (0, 0)),
            pl.BlockSpec((1, n_out_p), lambda j: (0, 0)),
        ],
        out_specs=pl.BlockSpec((b, n_out_p), lambda j: (0, 0)),
        scratch_shapes=[pltpu.VMEM((b, cp), jnp.float32)],
        compiler_params=pltpu.CompilerParams(
            dimension_semantics=("arbitrary",),
            vmem_limit_bytes=_VMEM_LIMIT),
    )(x2, w_p, b_p)
    return out[:, :n_out]


# ---------------------------------------------------------------------------
# Model: parameters + forward
# ---------------------------------------------------------------------------

def init_params(key, num_classes, in_ch=3, c1=8, c2=16):
    ks = jax.random.split(key, 4)
    return {
        # stem conv 1: 3x3 stride 2 (Inception Conv2d_1a_3x3 style, scaled down)
        "conv1_w": 0.1 * jax.random.normal(ks[0], (c1, in_ch, 3, 3), jnp.float32),
        "bn1_gamma": jnp.ones((c1,), jnp.float32),
        "bn1_beta": jnp.zeros((c1,), jnp.float32),
        "bn1_mean": jnp.zeros((c1,), jnp.float32),
        "bn1_var": jnp.ones((c1,), jnp.float32),
        # stem conv 2: 3x3 stride 1
        "conv2_w": 0.1 * jax.random.normal(ks[1], (c2, c1, 3, 3), jnp.float32),
        "bn2_gamma": jnp.ones((c2,), jnp.float32),
        "bn2_beta": jnp.zeros((c2,), jnp.float32),
        "bn2_mean": jnp.zeros((c2,), jnp.float32),
        "bn2_var": jnp.ones((c2,), jnp.float32),
        # replacement fc: Linear(in_features=c2, num_classes)
        "fc_w": 0.1 * jax.random.normal(ks[2], (c2, num_classes), jnp.float32),
        "fc_b": 0.01 * jax.random.normal(ks[3], (num_classes,), jnp.float32),
    }


def fine_tuned_inception_v3_forward(params, x_nchw):
    """Eval-mode forward of FineTunedInceptionV3 (mc_dropout=False => Identity)."""
    # NCHW (PyTorch) -> NHWC (lane-dense channels-last kernel layout)
    x = jnp.transpose(x_nchw, (0, 2, 3, 1)).astype(jnp.float32)

    # backbone stem: implicit-GEMM conv + folded BN + ReLU Pallas kernels
    x = conv_bn_relu(x, params["conv1_w"], params["bn1_gamma"], params["bn1_beta"],
                     params["bn1_mean"], params["bn1_var"], stride=2)
    x = conv_bn_relu(x, params["conv2_w"], params["bn2_gamma"], params["bn2_beta"],
                     params["bn2_mean"], params["bn2_var"], stride=1)

    # fused GAP + fc + Dropout(Identity) + Sigmoid (single Pallas kernel)
    return gap_fc_sigmoid(x, params["fc_w"], params["fc_b"])


# ---------------------------------------------------------------------------
# main
# ---------------------------------------------------------------------------

if __name__ == "__main__":
    num_classes = 4
    key = jax.random.PRNGKey(0)
    k_params, k_x = jax.random.split(key)

    params = init_params(k_params, num_classes)
    x = jax.random.normal(k_x, (2, 3, 16, 16), jnp.float32)   # NCHW, like PyTorch

    fwd = jax.jit(fine_tuned_inception_v3_forward)
    out = jax.block_until_ready(fwd(params, x))

    assert out.shape == (2, num_classes), out.shape
    assert bool(jnp.all((out >= 0.0) & (out <= 1.0))), "sigmoid output out of range"
    print("KERNEL_OK")
</pallas_src>

<mosaic_0001>
module attributes {stable_mosaic.version = 11 : i64} {
  func.func @_conv_bn_relu_kernel(%arg0: i32, %arg1: memref<1x320x128xf32, #tpu.memory_space<vmem>>, %arg2: memref<9x128x128xbf16, #tpu.memory_space<vmem>>, %arg3: memref<1x128xf32, #tpu.memory_space<vmem>>, %arg4: memref<1x64x128xf32, #tpu.memory_space<vmem>>) attributes {dimension_semantics = [#tpu.dimension_semantics<parallel>], iteration_bounds = array<i64: 2>, scalar_prefetch = 0 : i64, scratch_operands = 0 : i64, tpu.core_type = #tpu.core_type<tc>, window_params = [{transform_indices = @transform_0, window_bounds = array<i64: 1, 320, 128>}, {pipeline_mode = #tpu.pipeline_mode<synchronous>, transform_indices = @transform_1, window_bounds = array<i64: 9, 128, 128>}, {pipeline_mode = #tpu.pipeline_mode<synchronous>, transform_indices = @transform_2, window_bounds = array<i64: 1, 128>}, {transform_indices = @transform_3, window_bounds = array<i64: 1, 64, 128>}]} {
    %cst = arith.constant 0.000000e+00 : f32
    %0 = vector.broadcast %cst : f32 to vector<64x128xf32>
    %c0 = arith.constant 0 : index
    %c0_0 = arith.constant 0 : index
    %c0_1 = arith.constant 0 : index
    %1 = vector.load %arg1[%c0, %c0_0, %c0_1] : memref<1x320x128xf32, #tpu.memory_space<vmem>>, vector<1x64x128xf32>
    %2 = vector.shape_cast %1 : vector<1x64x128xf32> to vector<64x128xf32>
    %3 = arith.truncf %2 : vector<64x128xf32> to vector<64x128xbf16>
    %c0_2 = arith.constant 0 : index
    %c0_3 = arith.constant 0 : index
    %c0_4 = arith.constant 0 : index
    %4 = vector.load %arg2[%c0_2, %c0_3, %c0_4] : memref<9x128x128xbf16, #tpu.memory_space<vmem>>, vector<1x128x128xbf16>
    %5 = vector.shape_cast %4 : vector<1x128x128xbf16> to vector<128x128xbf16>
    %cst_5 = arith.constant dense<0.000000e+00> : vector<64x128xf32>
    %6 = tpu.matmul %3, %5, %cst_5 {dimension_numbers = #tpu.dot_dimension_numbers<[1], [0], [0], [1], [0, 0, 1, 1], [], []>} : vector<64x128xbf16>, vector<128x128xbf16>, vector<64x128xf32> -> vector<64x128xf32>
    %7 = arith.addf %0, %6 : vector<64x128xf32>
    %c0_6 = arith.constant 0 : index
    %c80 = arith.constant 80 : index
    %c0_7 = arith.constant 0 : index
    %8 = vector.load %arg1[%c0_6, %c80, %c0_7] : memref<1x320x128xf32, #tpu.memory_space<vmem>>, vector<1x64x128xf32>
    %9 = vector.shape_cast %8 : vector<1x64x128xf32> to vector<64x128xf32>
    %10 = arith.truncf %9 : vector<64x128xf32> to vector<64x128xbf16>
    %c1 = arith.constant 1 : index
    %c0_8 = arith.constant 0 : index
    %c0_9 = arith.constant 0 : index
    %11 = vector.load %arg2[%c1, %c0_8, %c0_9] : memref<9x128x128xbf16, #tpu.memory_space<vmem>>, vector<1x128x128xbf16>
    %12 = vector.shape_cast %11 : vector<1x128x128xbf16> to vector<128x128xbf16>
    %cst_10 = arith.constant dense<0.000000e+00> : vector<64x128xf32>
    %13 = tpu.matmul %10, %12, %cst_10 {dimension_numbers = #tpu.dot_dimension_numbers<[1], [0], [0], [1], [0, 0, 1, 1], [], []>} : vector<64x128xbf16>, vector<128x128xbf16>, vector<64x128xf32> -> vector<64x128xf32>
    %14 = arith.addf %7, %13 : vector<64x128xf32>
    %c0_11 = arith.constant 0 : index
    %c1_12 = arith.constant 1 : index
    %c0_13 = arith.constant 0 : index
    %15 = vector.load %arg1[%c0_11, %c1_12, %c0_13] : memref<1x320x128xf32, #tpu.memory_space<vmem>>, vector<1x64x128xf32>
    %16 = vector.shape_cast %15 : vector<1x64x128xf32> to vector<64x128xf32>
    %17 = arith.truncf %16 : vector<64x128xf32> to vector<64x128xbf16>
    %c2 = arith.constant 2 : index
    %c0_14 = arith.constant 0 : index
    %c0_15 = arith.constant 0 : index
    %18 = vector.load %arg2[%c2, %c0_14, %c0_15] : memref<9x128x128xbf16, #tpu.memory_space<vmem>>, vector<1x128x128xbf16>
    %19 = vector.shape_cast %18 : vector<1x128x128xbf16> to vector<128x128xbf16>
    %cst_16 = arith.constant dense<0.000000e+00> : vector<64x128xf32>
    %20 = tpu.matmul %17, %19, %cst_16 {dimension_numbers = #tpu.dot_dimension_numbers<[1], [0], [0], [1], [0, 0, 1, 1], [], []>} : vector<64x128xbf16>, vector<128x128xbf16>, vector<64x128xf32> -> vector<64x128xf32>
    %21 = arith.addf %14, %20 : vector<64x128xf32>
    %c0_17 = arith.constant 0 : index
    %c160 = arith.constant 160 : index
    %c0_18 = arith.constant 0 : index
    %22 = vector.load %arg1[%c0_17, %c160, %c0_18] : memref<1x320x128xf32, #tpu.memory_space<vmem>>, vector<1x64x128xf32>
    %23 = vector.shape_cast %22 : vector<1x64x128xf32> to vector<64x128xf32>
    %24 = arith.truncf %23 : vector<64x128xf32> to vector<64x128xbf16>
    %c3 = arith.constant 3 : index
    %c0_19 = arith.constant 0 : index
    %c0_20 = arith.constant 0 : index
    %25 = vector.load %arg2[%c3, %c0_19, %c0_20] : memref<9x128x128xbf16, #tpu.memory_space<vmem>>, vector<1x128x128xbf16>
    %26 = vector.shape_cast %25 : vector<1x128x128xbf16> to vector<128x128xbf16>
    %cst_21 = arith.constant dense<0.000000e+00> : vector<64x128xf32>
    %27 = tpu.matmul %24, %26, %cst_21 {dimension_numbers = #tpu.dot_dimension_numbers<[1], [0], [0], [1], [0, 0, 1, 1], [], []>} : vector<64x128xbf16>, vector<128x128xbf16>, vector<64x128xf32> -> vector<64x128xf32>
    %28 = arith.addf %21, %27 : vector<64x128xf32>
    %c0_22 = arith.constant 0 : index
    %c240 = arith.constant 240 : index
    %c0_23 = arith.constant 0 : index
    %29 = vector.load %arg1[%c0_22, %c240, %c0_23] : memref<1x320x128xf32, #tpu.memory_space<vmem>>, vector<1x64x128xf32>
    %30 = vector.shape_cast %29 : vector<1x64x128xf32> to vector<64x128xf32>
    %31 = arith.truncf %30 : vector<64x128xf32> to vector<64x128xbf16>
    %c4 = arith.constant 4 : index
    %c0_24 = arith.constant 0 : index
    %c0_25 = arith.constant 0 : index
    %32 = vector.load %arg2[%c4, %c0_24, %c0_25] : memref<9x128x128xbf16, #tpu.memory_space<vmem>>, vector<1x128x128xbf16>
    %33 = vector.shape_cast %32 : vector<1x128x128xbf16> to vector<128x128xbf16>
    %cst_26 = arith.constant dense<0.000000e+00> : vector<64x128xf32>
    %34 = tpu.matmul %31, %33, %cst_26 {dimension_numbers = #tpu.dot_dimension_numbers<[1], [0], [0], [1], [0, 0, 1, 1], [], []>} : vector<64x128xbf16>, vector<128x128xbf16>, vector<64x128xf32> -> vector<64x128xf32>
    %35 = arith.addf %28, %34 : vector<64x128xf32>
    %c0_27 = arith.constant 0 : index
    %c161 = arith.constant 161 : index
    %c0_28 = arith.constant 0 : index
    %36 = vector.load %arg1[%c0_27, %c161, %c0_28] : memref<1x320x128xf32, #tpu.memory_space<vmem>>, vector<1x64x128xf32>
    %37 = vector.shape_cast %36 : vector<1x64x128xf32> to vector<64x128xf32>
    %38 = arith.truncf %37 : vector<64x128xf32> to vector<64x128xbf16>
    %c5 = arith.constant 5 : index
    %c0_29 = arith.constant 0 : index
    %c0_30 = arith.constant 0 : index
    %39 = vector.load %arg2[%c5, %c0_29, %c0_30] : memref<9x128x128xbf16, #tpu.memory_space<vmem>>, vector<1x128x128xbf16>
    %40 = vector.shape_cast %39 : vector<1x128x128xbf16> to vector<128x128xbf16>
    %cst_31 = arith.constant dense<0.000000e+00> : vector<64x128xf32>
    %41 = tpu.matmul %38, %40, %cst_31 {dimension_numbers = #tpu.dot_dimension_numbers<[1], [0], [0], [1], [0, 0, 1, 1], [], []>} : vector<64x128xbf16>, vector<128x128xbf16>, vector<64x128xf32> -> vector<64x128xf32>
    %42 = arith.addf %35, %41 : vector<64x128xf32>
    %c0_32 = arith.constant 0 : index
    %c8 = arith.constant 8 : index
    %c0_33 = arith.constant 0 : index
    %43 = vector.load %arg1[%c0_32, %c8, %c0_33] : memref<1x320x128xf32, #tpu.memory_space<vmem>>, vector<1x64x128xf32>
    %44 = vector.shape_cast %43 : vector<1x64x128xf32> to vector<64x128xf32>
    %45 = arith.truncf %44 : vector<64x128xf32> to vector<64x128xbf16>
    %c6 = arith.constant 6 : index
    %c0_34 = arith.constant 0 : index
    %c0_35 = arith.constant 0 : index
    %46 = vector.load %arg2[%c6, %c0_34, %c0_35] : memref<9x128x128xbf16, #tpu.memory_space<vmem>>, vector<1x128x128xbf16>
    %47 = vector.shape_cast %46 : vector<1x128x128xbf16> to vector<128x128xbf16>
    %cst_36 = arith.constant dense<0.000000e+00> : vector<64x128xf32>
    %48 = tpu.matmul %45, %47, %cst_36 {dimension_numbers = #tpu.dot_dimension_numbers<[1], [0], [0], [1], [0, 0, 1, 1], [], []>} : vector<64x128xbf16>, vector<128x128xbf16>, vector<64x128xf32> -> vector<64x128xf32>
    %49 = arith.addf %42, %48 : vector<64x128xf32>
    %c0_37 = arith.constant 0 : index
    %c88 = arith.constant 88 : index
    %c0_38 = arith.constant 0 : index
    %50 = vector.load %arg1[%c0_37, %c88, %c0_38] : memref<1x320x128xf32, #tpu.memory_space<vmem>>, vector<1x64x128xf32>
    %51 = vector.shape_cast %50 : vector<1x64x128xf32> to vector<64x128xf32>
    %52 = arith.truncf %51 : vector<64x128xf32> to vector<64x128xbf16>
    %c7 = arith.constant 7 : index
    %c0_39 = arith.constant 0 : index
    %c0_40 = arith.constant 0 : index
    %53 = vector.load %arg2[%c7, %c0_39, %c0_40] : memref<9x128x128xbf16, #tpu.memory_space<vmem>>, vector<1x128x128xbf16>
    %54 = vector.shape_cast %53 : vector<1x128x128xbf16> to vector<128x128xbf16>
    %cst_41 = arith.constant dense<0.000000e+00> : vector<64x128xf32>
    %55 = tpu.matmul %52, %54, %cst_41 {dimension_numbers = #tpu.dot_dimension_numbers<[1], [0], [0], [1], [0, 0, 1, 1], [], []>} : vector<64x128xbf16>, vector<128x128xbf16>, vector<64x128xf32> -> vector<64x128xf32>
    %56 = arith.addf %49, %55 : vector<64x128xf32>
    %c0_42 = arith.constant 0 : index
    %c9 = arith.constant 9 : index
    %c0_43 = arith.constant 0 : index
    %57 = vector.load %arg1[%c0_42, %c9, %c0_43] : memref<1x320x128xf32, #tpu.memory_space<vmem>>, vector<1x64x128xf32>
    %58 = vector.shape_cast %57 : vector<1x64x128xf32> to vector<64x128xf32>
    %59 = arith.truncf %58 : vector<64x128xf32> to vector<64x128xbf16>
    %c8_44 = arith.constant 8 : index
    %c0_45 = arith.constant 0 : index
    %c0_46 = arith.constant 0 : index
    %60 = vector.load %arg2[%c8_44, %c0_45, %c0_46] : memref<9x128x128xbf16, #tpu.memory_space<vmem>>, vector<1x128x128xbf16>
    %61 = vector.shape_cast %60 : vector<1x128x128xbf16> to vector<128x128xbf16>
    %cst_47 = arith.constant dense<0.000000e+00> : vector<64x128xf32>
    %62 = tpu.matmul %59, %61, %cst_47 {dimension_numbers = #tpu.dot_dimension_numbers<[1], [0], [0], [1], [0, 0, 1, 1], [], []>} : vector<64x128xbf16>, vector<128x128xbf16>, vector<64x128xf32> -> vector<64x128xf32>
    %63 = arith.addf %56, %62 : vector<64x128xf32>
    %c0_48 = arith.constant 0 : index
    %c0_49 = arith.constant 0 : index
    %64 = vector.load %arg3[%c0_48, %c0_49] : memref<1x128xf32, #tpu.memory_space<vmem>>, vector<1x128xf32>
    %65 = vector.broadcast %64 : vector<1x128xf32> to vector<64x128xf32>
    %66 = arith.addf %63, %65 : vector<64x128xf32>
    %cst_50 = arith.constant 0.000000e+00 : f32
    %67 = vector.broadcast %cst_50 : f32 to vector<64x128xf32>
    %68 = arith.maximumf %66, %67 : vector<64x128xf32>
    %c0_51 = arith.constant 0 : index
    %c0_52 = arith.constant 0 : index
    %c0_53 = arith.constant 0 : index
    %69 = vector.load %arg4[%c0_51, %c0_52, %c0_53] : memref<1x64x128xf32, #tpu.memory_space<vmem>>, vector<1x64x128xf32>
    %70 = vector.shape_cast %69 : vector<1x64x128xf32> to vector<64x128xf32>
    %71 = vector.shape_cast %68 : vector<64x128xf32> to vector<1x64x128xf32>
    tpu.vector_store %arg4[%c0_51, %c0_52, %c0_53], %71 {strides = array<i32>} : memref<1x64x128xf32, #tpu.memory_space<vmem>>, vector<1x64x128xf32>,
    return
  }
  func.func @transform_0(%arg0: i32) -> (i32, i32, i32) {
    %c0_i32 = arith.constant 0 : i32
    %c0_i32_0 = arith.constant 0 : i32
    %c0_i32_1 = arith.constant 0 : i32
    return %arg0, %c0_i32, %c0_i32_0 : i32, i32, i32
  }
  func.func @transform_1(%arg0: i32) -> (i32, i32, i32) {
    %c0_i32 = arith.constant 0 : i32
    %c0_i32_0 = arith.constant 0 : i32
    %c0_i32_1 = arith.constant 0 : i32
    %c0_i32_2 = arith.constant 0 : i32
    return %c0_i32, %c0_i32_0, %c0_i32_1 : i32, i32, i32
  }
  func.func @transform_2(%arg0: i32) -> (i32, i32) {
    %c0_i32 = arith.constant 0 : i32
    %c0_i32_0 = arith.constant 0 : i32
    %c0_i32_1 = arith.constant 0 : i32
    return %c0_i32, %c0_i32_0 : i32, i32
  }
  func.func @transform_3(%arg0: i32) -> (i32, i32, i32) {
    %c0_i32 = arith.constant 0 : i32
    %c0_i32_0 = arith.constant 0 : i32
    %c0_i32_1 = arith.constant 0 : i32
    return %arg0, %c0_i32, %c0_i32_0 : i32, i32, i32
  }
}

module attributes {stable_mosaic.version = 11 : i64} {
  func.func @_conv_bn_relu_kernel(%arg0: i32, %arg1: memref<1x72x128xf32, #tpu.memory_space<vmem>>, %arg2: memref<9x128x128xbf16, #tpu.memory_space<vmem>>, %arg3: memref<1x128xf32, #tpu.memory_space<vmem>>, %arg4: memref<1x56x128xf32, #tpu.memory_space<vmem>>) attributes {dimension_semantics = [#tpu.dimension_semantics<parallel>], iteration_bounds = array<i64: 2>, scalar_prefetch = 0 : i64, scratch_operands = 0 : i64, tpu.core_type = #tpu.core_type<tc>, window_params = [{transform_indices = @transform_0, window_bounds = array<i64: 1, 72, 128>}, {pipeline_mode = #tpu.pipeline_mode<synchronous>, transform_indices = @transform_1, window_bounds = array<i64: 9, 128, 128>}, {pipeline_mode = #tpu.pipeline_mode<synchronous>, transform_indices = @transform_2, window_bounds = array<i64: 1, 128>}, {transform_indices = @transform_3, window_bounds = array<i64: 1, 56, 128>}]} {
    %cst = arith.constant 0.000000e+00 : f32
    %0 = vector.broadcast %cst : f32 to vector<56x128xf32>
    %c0 = arith.constant 0 : index
    %c0_0 = arith.constant 0 : index
    %c0_1 = arith.constant 0 : index
    %1 = vector.load %arg1[%c0, %c0_0, %c0_1] : memref<1x72x128xf32, #tpu.memory_space<vmem>>, vector<1x56x128xf32>
    %2 = vector.shape_cast %1 : vector<1x56x128xf32> to vector<56x128xf32>
    %3 = arith.truncf %2 : vector<56x128xf32> to vector<56x128xbf16>
    %c0_2 = arith.constant 0 : index
    %c0_3 = arith.constant 0 : index
    %c0_4 = arith.constant 0 : index
    %4 = vector.load %arg2[%c0_2, %c0_3, %c0_4] : memref<9x128x128xbf16, #tpu.memory_space<vmem>>, vector<1x128x128xbf16>
    %5 = vector.shape_cast %4 : vector<1x128x128xbf16> to vector<128x128xbf16>
    %cst_5 = arith.constant dense<0.000000e+00> : vector<56x128xf32>
    %6 = tpu.matmul %3, %5, %cst_5 {dimension_numbers = #tpu.dot_dimension_numbers<[1], [0], [0], [1], [0, 0, 1, 1], [], []>} : vector<56x128xbf16>, vector<128x128xbf16>, vector<56x128xf32> -> vector<56x128xf32>
    %7 = arith.addf %0, %6 : vector<56x128xf32>
    %c0_6 = arith.constant 0 : index
    %c1 = arith.constant 1 : index
    %c0_7 = arith.constant 0 : index
    %8 = vector.load %arg1[%c0_6, %c1, %c0_7] : memref<1x72x128xf32, #tpu.memory_space<vmem>>, vector<1x56x128xf32>
    %9 = vector.shape_cast %8 : vector<1x56x128xf32> to vector<56x128xf32>
    %10 = arith.truncf %9 : vector<56x128xf32> to vector<56x128xbf16>
    %c1_8 = arith.constant 1 : index
    %c0_9 = arith.constant 0 : index
    %c0_10 = arith.constant 0 : index
    %11 = vector.load %arg2[%c1_8, %c0_9, %c0_10] : memref<9x128x128xbf16, #tpu.memory_space<vmem>>, vector<1x128x128xbf16>
    %12 = vector.shape_cast %11 : vector<1x128x128xbf16> to vector<128x128xbf16>
    %cst_11 = arith.constant dense<0.000000e+00> : vector<56x128xf32>
    %13 = tpu.matmul %10, %12, %cst_11 {dimension_numbers = #tpu.dot_dimension_numbers<[1], [0], [0], [1], [0, 0, 1, 1], [], []>} : vector<56x128xbf16>, vector<128x128xbf16>, vector<56x128xf32> -> vector<56x128xf32>
    %14 = arith.addf %7, %13 : vector<56x128xf32>
    %c0_12 = arith.constant 0 : index
    %c2 = arith.constant 2 : index
    %c0_13 = arith.constant 0 : index
    %15 = vector.load %arg1[%c0_12, %c2, %c0_13] : memref<1x72x128xf32, #tpu.memory_space<vmem>>, vector<1x56x128xf32>
    %16 = vector.shape_cast %15 : vector<1x56x128xf32> to vector<56x128xf32>
    %17 = arith.truncf %16 : vector<56x128xf32> to vector<56x128xbf16>
    %c2_14 = arith.constant 2 : index
    %c0_15 = arith.constant 0 : index
    %c0_16 = arith.constant 0 : index
    %18 = vector.load %arg2[%c2_14, %c0_15, %c0_16] : memref<9x128x128xbf16, #tpu.memory_space<vmem>>, vector<1x128x128xbf16>
    %19 = vector.shape_cast %18 : vector<1x128x128xbf16> to vector<128x128xbf16>
    %cst_17 = arith.constant dense<0.000000e+00> : vector<56x128xf32>
    %20 = tpu.matmul %17, %19, %cst_17 {dimension_numbers = #tpu.dot_dimension_numbers<[1], [0], [0], [1], [0, 0, 1, 1], [], []>} : vector<56x128xbf16>, vector<128x128xbf16>, vector<56x128xf32> -> vector<56x128xf32>
    %21 = arith.addf %14, %20 : vector<56x128xf32>
    %c0_18 = arith.constant 0 : index
    %c7 = arith.constant 7 : index
    %c0_19 = arith.constant 0 : index
    %22 = vector.load %arg1[%c0_18, %c7, %c0_19] : memref<1x72x128xf32, #tpu.memory_space<vmem>>, vector<1x56x128xf32>
    %23 = vector.shape_cast %22 : vector<1x56x128xf32> to vector<56x128xf32>
    %24 = arith.truncf %23 : vector<56x128xf32> to vector<56x128xbf16>
    %c3 = arith.constant 3 : index
    %c0_20 = arith.constant 0 : index
    %c0_21 = arith.constant 0 : index
    %25 = vector.load %arg2[%c3, %c0_20, %c0_21] : memref<9x128x128xbf16, #tpu.memory_space<vmem>>, vector<1x128x128xbf16>
    %26 = vector.shape_cast %25 : vector<1x128x128xbf16> to vector<128x128xbf16>
    %cst_22 = arith.constant dense<0.000000e+00> : vector<56x128xf32>
    %27 = tpu.matmul %24, %26, %cst_22 {dimension_numbers = #tpu.dot_dimension_numbers<[1], [0], [0], [1], [0, 0, 1, 1], [], []>} : vector<56x128xbf16>, vector<128x128xbf16>, vector<56x128xf32> -> vector<56x128xf32>
    %28 = arith.addf %21, %27 : vector<56x128xf32>
    %c0_23 = arith.constant 0 : index
    %c8 = arith.constant 8 : index
    %c0_24 = arith.constant 0 : index
    %29 = vector.load %arg1[%c0_23, %c8, %c0_24] : memref<1x72x128xf32, #tpu.memory_space<vmem>>, vector<1x56x128xf32>
    %30 = vector.shape_cast %29 : vector<1x56x128xf32> to vector<56x128xf32>
    %31 = arith.truncf %30 : vector<56x128xf32> to vector<56x128xbf16>
    %c4 = arith.constant 4 : index
    %c0_25 = arith.constant 0 : index
    %c0_26 = arith.constant 0 : index
    %32 = vector.load %arg2[%c4, %c0_25, %c0_26] : memref<9x128x128xbf16, #tpu.memory_space<vmem>>, vector<1x128x128xbf16>
    %33 = vector.shape_cast %32 : vector<1x128x128xbf16> to vector<128x128xbf16>
    %cst_27 = arith.constant dense<0.000000e+00> : vector<56x128xf32>
    %34 = tpu.matmul %31, %33, %cst_27 {dimension_numbers = #tpu.dot_dimension_numbers<[1], [0], [0], [1], [0, 0, 1, 1], [], []>} : vector<56x128xbf16>, vector<128x128xbf16>, vector<56x128xf32> -> vector<56x128xf32>
    %35 = arith.addf %28, %34 : vector<56x128xf32>
    %c0_28 = arith.constant 0 : index
    %c9 = arith.constant 9 : index
    %c0_29 = arith.constant 0 : index
    %36 = vector.load %arg1[%c0_28, %c9, %c0_29] : memref<1x72x128xf32, #tpu.memory_space<vmem>>, vector<1x56x128xf32>
    %37 = vector.shape_cast %36 : vector<1x56x128xf32> to vector<56x128xf32>
    %38 = arith.truncf %37 : vector<56x128xf32> to vector<56x128xbf16>
    %c5 = arith.constant 5 : index
    %c0_30 = arith.constant 0 : index
    %c0_31 = arith.constant 0 : index
    %39 = vector.load %arg2[%c5, %c0_30, %c0_31] : memref<9x128x128xbf16, #tpu.memory_space<vmem>>, vector<1x128x128xbf16>
    %40 = vector.shape_cast %39 : vector<1x128x128xbf16> to vector<128x128xbf16>
    %cst_32 = arith.constant dense<0.000000e+00> : vector<56x128xf32>
    %41 = tpu.matmul %38, %40, %cst_32 {dimension_numbers = #tpu.dot_dimension_numbers<[1], [0], [0], [1], [0, 0, 1, 1], [], []>} : vector<56x128xbf16>, vector<128x128xbf16>, vector<56x128xf32> -> vector<56x128xf32>
    %42 = arith.addf %35, %41 : vector<56x128xf32>
    %c0_33 = arith.constant 0 : index
    %c14 = arith.constant 14 : index
    %c0_34 = arith.constant 0 : index
    %43 = vector.load %arg1[%c0_33, %c14, %c0_34] : memref<1x72x128xf32, #tpu.memory_space<vmem>>, vector<1x56x128xf32>
    %44 = vector.shape_cast %43 : vector<1x56x128xf32> to vector<56x128xf32>
    %45 = arith.truncf %44 : vector<56x128xf32> to vector<56x128xbf16>
    %c6 = arith.constant 6 : index
    %c0_35 = arith.constant 0 : index
    %c0_36 = arith.constant 0 : index
    %46 = vector.load %arg2[%c6, %c0_35, %c0_36] : memref<9x128x128xbf16, #tpu.memory_space<vmem>>, vector<1x128x128xbf16>
    %47 = vector.shape_cast %46 : vector<1x128x128xbf16> to vector<128x128xbf16>
    %cst_37 = arith.constant dense<0.000000e+00> : vector<56x128xf32>
    %48 = tpu.matmul %45, %47, %cst_37 {dimension_numbers = #tpu.dot_dimension_numbers<[1], [0], [0], [1], [0, 0, 1, 1], [], []>} : vector<56x128xbf16>, vector<128x128xbf16>, vector<56x128xf32> -> vector<56x128xf32>
    %49 = arith.addf %42, %48 : vector<56x128xf32>
    %c0_38 = arith.constant 0 : index
    %c15 = arith.constant 15 : index
    %c0_39 = arith.constant 0 : index
    %50 = vector.load %arg1[%c0_38, %c15, %c0_39] : memref<1x72x128xf32, #tpu.memory_space<vmem>>, vector<1x56x128xf32>
    %51 = vector.shape_cast %50 : vector<1x56x128xf32> to vector<56x128xf32>
    %52 = arith.truncf %51 : vector<56x128xf32> to vector<56x128xbf16>
    %c7_40 = arith.constant 7 : index
    %c0_41 = arith.constant 0 : index
    %c0_42 = arith.constant 0 : index
    %53 = vector.load %arg2[%c7_40, %c0_41, %c0_42] : memref<9x128x128xbf16, #tpu.memory_space<vmem>>, vector<1x128x128xbf16>
    %54 = vector.shape_cast %53 : vector<1x128x128xbf16> to vector<128x128xbf16>
    %cst_43 = arith.constant dense<0.000000e+00> : vector<56x128xf32>
    %55 = tpu.matmul %52, %54, %cst_43 {dimension_numbers = #tpu.dot_dimension_numbers<[1], [0], [0], [1], [0, 0, 1, 1], [], []>} : vector<56x128xbf16>, vector<128x128xbf16>, vector<56x128xf32> -> vector<56x128xf32>
    %56 = arith.addf %49, %55 : vector<56x128xf32>
    %c0_44 = arith.constant 0 : index
    %c16 = arith.constant 16 : index
    %c0_45 = arith.constant 0 : index
    %57 = vector.load %arg1[%c0_44, %c16, %c0_45] : memref<1x72x128xf32, #tpu.memory_space<vmem>>, vector<1x56x128xf32>
    %58 = vector.shape_cast %57 : vector<1x56x128xf32> to vector<56x128xf32>
    %59 = arith.truncf %58 : vector<56x128xf32> to vector<56x128xbf16>
    %c8_46 = arith.constant 8 : index
    %c0_47 = arith.constant 0 : index
    %c0_48 = arith.constant 0 : index
    %60 = vector.load %arg2[%c8_46, %c0_47, %c0_48] : memref<9x128x128xbf16, #tpu.memory_space<vmem>>, vector<1x128x128xbf16>
    %61 = vector.shape_cast %60 : vector<1x128x128xbf16> to vector<128x128xbf16>
    %cst_49 = arith.constant dense<0.000000e+00> : vector<56x128xf32>
    %62 = tpu.matmul %59, %61, %cst_49 {dimension_numbers = #tpu.dot_dimension_numbers<[1], [0], [0], [1], [0, 0, 1, 1], [], []>} : vector<56x128xbf16>, vector<128x128xbf16>, vector<56x128xf32> -> vector<56x128xf32>
    %63 = arith.addf %56, %62 : vector<56x128xf32>
    %c0_50 = arith.constant 0 : index
    %c0_51 = arith.constant 0 : index
    %64 = vector.load %arg3[%c0_50, %c0_51] : memref<1x128xf32, #tpu.memory_space<vmem>>, vector<1x128xf32>
    %65 = vector.broadcast %64 : vector<1x128xf32> to vector<56x128xf32>
    %66 = arith.addf %63, %65 : vector<56x128xf32>
    %cst_52 = arith.constant 0.000000e+00 : f32
    %67 = vector.broadcast %cst_52 : f32 to vector<56x128xf32>
    %68 = arith.maximumf %66, %67 : vector<56x128xf32>
    %c0_53 = arith.constant 0 : index
    %c0_54 = arith.constant 0 : index
    %c0_55 = arith.constant 0 : index
    %69 = vector.load %arg4[%c0_53, %c0_54, %c0_55] : memref<1x56x128xf32, #tpu.memory_space<vmem>>, vector<1x56x128xf32>
    %70 = vector.shape_cast %69 : vector<1x56x128xf32> to vector<56x128xf32>
    %71 = vector.shape_cast %68 : vector<56x128xf32> to vector<1x56x128xf32>
    tpu.vector_store %arg4[%c0_53, %c0_54, %c0_55], %71 {strides = array<i32>} : memref<1x56x128xf32, #tpu.memory_space<vmem>>, vector<1x56x128xf32>,
    return
  }
  func.func @transform_0(%arg0: i32) -> (i32, i32, i32) {
    %c0_i32 = arith.constant 0 : i32
    %c0_i32_0 = arith.constant 0 : i32
    %c0_i32_1 = arith.constant 0 : i32
    return %arg0, %c0_i32, %c0_i32_0 : i32, i32, i32
  }
  func.func @transform_1(%arg0: i32) -> (i32, i32, i32) {
    %c0_i32 = arith.constant 0 : i32
    %c0_i32_0 = arith.constant 0 : i32
    %c0_i32_1 = arith.constant 0 : i32
    %c0_i32_2 = arith.constant 0 : i32
    return %c0_i32, %c0_i32_0, %c0_i32_1 : i32, i32, i32
  }
  func.func @transform_2(%arg0: i32) -> (i32, i32) {
    %c0_i32 = arith.constant 0 : i32
    %c0_i32_0 = arith.constant 0 : i32
    %c0_i32_1 = arith.constant 0 : i32
    return %c0_i32, %c0_i32_0 : i32, i32
  }
  func.func @transform_3(%arg0: i32) -> (i32, i32, i32) {
    %c0_i32 = arith.constant 0 : i32
    %c0_i32_0 = arith.constant 0 : i32
    %c0_i32_1 = arith.constant 0 : i32
    return %arg0, %c0_i32, %c0_i32_0 : i32, i32, i32
  }
}

module attributes {stable_mosaic.version = 11 : i64} {
  func.func @_gap_fc_sigmoid_kernel(%arg0: i32, %arg1: memref<2x8x128xf32, #tpu.memory_space<vmem>>, %arg2: memref<128x128xbf16, #tpu.memory_space<vmem>>, %arg3: memref<1x128xf32, #tpu.memory_space<vmem>>, %arg4: memref<2x128xf32, #tpu.memory_space<vmem>>, %arg5: memref<2x128xf32, #tpu.memory_space<vmem>>) attributes {dimension_semantics = [#tpu.dimension_semantics<arbitrary>], iteration_bounds = array<i64: 4>, scalar_prefetch = 0 : i64, scratch_operands = 1 : i64, tpu.core_type = #tpu.core_type<tc>, window_params = [{transform_indices = @transform_0, window_bounds = array<i64: 2, 8, 128>}, {pipeline_mode = #tpu.pipeline_mode<synchronous>, transform_indices = @transform_1, window_bounds = array<i64: 128, 128>}, {pipeline_mode = #tpu.pipeline_mode<synchronous>, transform_indices = @transform_2, window_bounds = array<i64: 1, 128>}, {pipeline_mode = #tpu.pipeline_mode<synchronous>, transform_indices = @transform_3, window_bounds = array<i64: 2, 128>}]} {
    %c0_i32 = arith.constant 0 : i32
    %0 = arith.cmpi eq, %arg0, %c0_i32 : i32
    %1 = arith.extui %0 : i1 to i32
    %c0_i32_0 = arith.constant 0 : i32
    %2 = arith.cmpi ne, %1, %c0_i32_0 : i32
    scf.if %2 {
      %cst_8 = arith.constant 0.000000e+00 : f32
      %11 = vector.broadcast %cst_8 : f32 to vector<2x128xf32>
      %c0_9 = arith.constant 0 : index
      %c0_10 = arith.constant 0 : index
      %12 = vector.load %arg5[%c0_9, %c0_10] : memref<2x128xf32, #tpu.memory_space<vmem>>, vector<2x128xf32>
      tpu.vector_store %arg5[%c0_9, %c0_10], %11 {strides = array<i32>} : memref<2x128xf32, #tpu.memory_space<vmem>>, vector<2x128xf32>,
    } else {
    }
    %c0 = arith.constant 0 : index
    %c0_1 = arith.constant 0 : index
    %3 = vector.load %arg5[%c0, %c0_1] : memref<2x128xf32, #tpu.memory_space<vmem>>, vector<2x128xf32>
    %c0_2 = arith.constant 0 : index
    %c0_3 = arith.constant 0 : index
    %c0_4 = arith.constant 0 : index
    %4 = vector.load %arg1[%c0_2, %c0_3, %c0_4] : memref<2x8x128xf32, #tpu.memory_space<vmem>>, vector<2x8x128xf32>
    %cst = arith.constant dense<0.000000e+00> : vector<2x128xf32>
    %5 = vector.multi_reduction <add>, %4, %cst [1] : vector<2x8x128xf32> to vector<2x128xf32>
    %6 = arith.addf %3, %5 : vector<2x128xf32>
    %c0_5 = arith.constant 0 : index
    %c0_6 = arith.constant 0 : index
    %7 = vector.load %arg5[%c0_5, %c0_6] : memref<2x128xf32, #tpu.memory_space<vmem>>, vector<2x128xf32>
    tpu.vector_store %arg5[%c0_5, %c0_6], %6 {strides = array<i32>} : memref<2x128xf32, #tpu.memory_space<vmem>>, vector<2x128xf32>,
    %c3_i32 = arith.constant 3 : i32
    %8 = arith.cmpi eq, %arg0, %c3_i32 : i32
    %9 = arith.extui %8 : i1 to i32
    %c0_i32_7 = arith.constant 0 : i32
    %10 = arith.cmpi ne, %9, %c0_i32_7 : i32
    scf.if %10 {
      %c0_8 = arith.constant 0 : index
      %c0_9 = arith.constant 0 : index
      %11 = vector.load %arg5[%c0_8, %c0_9] : memref<2x128xf32, #tpu.memory_space<vmem>>, vector<2x128xf32>
      %cst_10 = arith.constant 4.000000e-02 : f32
      %12 = vector.broadcast %cst_10 : f32 to vector<2x128xf32>
      %13 = arith.mulf %11, %12 : vector<2x128xf32>
      %14 = arith.truncf %13 : vector<2x128xf32> to vector<2x128xbf16>
      %c0_11 = arith.constant 0 : index
      %c0_12 = arith.constant 0 : index
      %15 = vector.load %arg2[%c0_11, %c0_12] : memref<128x128xbf16, #tpu.memory_space<vmem>>, vector<128x128xbf16>
      %cst_13 = arith.constant dense<0.000000e+00> : vector<2x128xf32>
      %16 = tpu.matmul %14, %15, %cst_13 {dimension_numbers = #tpu.dot_dimension_numbers<[1], [0], [0], [1], [0, 0, 1, 1], [], []>} : vector<2x128xbf16>, vector<128x128xbf16>, vector<2x128xf32> -> vector<2x128xf32>
      %c0_14 = arith.constant 0 : index
      %c0_15 = arith.constant 0 : index
      %17 = vector.load %arg3[%c0_14, %c0_15] : memref<1x128xf32, #tpu.memory_space<vmem>>, vector<1x128xf32>
      %18 = vector.broadcast %17 : vector<1x128xf32> to vector<2x128xf32>
      %19 = arith.addf %16, %18 : vector<2x128xf32>
      %cst_16 = arith.constant 0.000000e+00 : f32
      %20 = vector.broadcast %cst_16 : f32 to vector<2x128xf32>
      %21 = arith.subf %20, %19 : vector<2x128xf32>
      %22 = math.exp %21 : vector<2x128xf32>
      %cst_17 = arith.constant 1.000000e+00 : f32
      %23 = vector.broadcast %cst_17 : f32 to vector<2x128xf32>
      %24 = arith.addf %23, %22 : vector<2x128xf32>
      %25 = tpu.reciprocal %24 {approx = true} : vector<2x128xf32> -> vector<2x128xf32>
      %cst_18 = arith.constant 0.000000e+00 : f32
      %cst_19 = arith.constant 1.000000e+00 : f32
      %26 = vector.broadcast %cst_18 : f32 to vector<2x128xf32>
      %27 = arith.maximumf %26, %25 : vector<2x128xf32>
      %28 = vector.broadcast %cst_19 : f32 to vector<2x128xf32>
      %29 = arith.minimumf %28, %27 : vector<2x128xf32>
      %c0_20 = arith.constant 0 : index
      %c0_21 = arith.constant 0 : index
      %30 = vector.load %arg4[%c0_20, %c0_21] : memref<2x128xf32, #tpu.memory_space<vmem>>, vector<2x128xf32>
      tpu.vector_store %arg4[%c0_20, %c0_21], %29 {strides = array<i32>} : memref<2x128xf32, #tpu.memory_space<vmem>>, vector<2x128xf32>,
    } else {
    }
    return
  }
  func.func @transform_0(%arg0: i32) -> (i32, i32, i32) {
    %c0_i32 = arith.constant 0 : i32
    %c0_i32_0 = arith.constant 0 : i32
    %c0_i32_1 = arith.constant 0 : i32
    return %c0_i32, %arg0, %c0_i32_0 : i32, i32, i32
  }
  func.func @transform_1(%arg0: i32) -> (i32, i32) {
    %c0_i32 = arith.constant 0 : i32
    %c0_i32_0 = arith.constant 0 : i32
    %c0_i32_1 = arith.constant 0 : i32
    return %c0_i32, %c0_i32_0 : i32, i32
  }
  func.func @transform_2(%arg0: i32) -> (i32, i32) {
    %c0_i32 = arith.constant 0 : i32
    %c0_i32_0 = arith.constant 0 : i32
    %c0_i32_1 = arith.constant 0 : i32
    return %c0_i32, %c0_i32_0 : i32, i32
  }
  func.func @transform_3(%arg0: i32) -> (i32, i32) {
    %c0_i32 = arith.constant 0 : i32
    %c0_i32_0 = arith.constant 0 : i32
    %c0_i32_1 = arith.constant 0 : i32
    return %c0_i32, %c0_i32_0 : i32, i32
  }
}

</mosaic_0001>

<bundles_post_ra>
// kernel: fine_tuned_inception_v3_forward.5
= control target key start
LH: loop header
LB: loop body
LE: loop exit
PB: predicated region body
PF: predicated region fallthrough
CT: control target
= control target key end

     0   :  { %8 = vsyncpa [#allocation5], 0  ;;  %s576_s12 = smov 0   ;;  %s578_s13 = smov 0   ;;  %s667_s0 = inlined_call_operand.vmem [shape: f32[2,32,128], index: 0, kind: input, shape index: {}]   ;;  %s668_s1 = inlined_call_operand.vmem [shape: bf16[128,128], index: 1, kind: input, shape index: {}]   ;;  %s669_s2 = inlined_call_operand.vmem [shape: f32[1,128], index: 2, kind: input, shape index: {}]   ;;  %s670_s3 = inlined_call_operand.hbm [shape: f32[2,128], index: 3, kind: output, shape index: {}]  }
   0x1   :  { %s580_s14 = smov 0  }
   0x2 LB: > { %s589_s15 = sadd.s32 4294967295, %s550_s14   ;;  %s591_s16 = sadd.s32 1, %s550_s14   ;;  %s550_s14 = sphi %s580_s14, %s673_s14   ;;  %s546_s13 = sphi %s578_s13, %s672_s13   ;;  %s542_s12 = sphi %s576_s12, %s671_s12  }
   0x3   : > { %s18_s17 = ssub.s32 %s550_s14, %s591_s16  ;;  %s21_s18 = sadd.s32 1, %s546_s13 }
   0x4   : > { %p19_p0 = scmp.eq.s32.totalorder %s18_s17, 0  ;;  %p28_p1 = scmp.ne.s32.totalorder %s546_s13, %s542_s12 }
   0x5   : > { %p29_p2 = scmp.eq.s32.totalorder %s550_s14, 0  ;;  %p403_p4 = scmp.ge.s32.totalorder %s550_s14, 4 }
   0x6   : > { %s598_s19 = scalar_select %p19_p0, %s546_s13, %s21_s18  }
   0x7   : > { %p30_p3 = por %p29_p2, %p28_p1  ;;  %123 = sbr.rel (%p403_p4) target bundleno = 21 (0x15), region = 24 }
   0xe   : > { %126 = sbr.rel (!%p30_p3) target bundleno = 21 (0x15), region = 28  ;;  %s128_s20 = sand.u32 (%p30_p3), 1, %s546_s13  }
   0xf   : > { %s405_s21 = sshll.u32 (%p30_p3), %s550_s14, 3  ;;  %s404_s22 = sshll.u32 (%p30_p3), %s128_s20, 4 }
  0x10   : > { %s132_s25 = scalar_lea.vmem (%p30_p3), %s667_s0, %s405_s21  ;;  %s130_s26 = scalar_lea.vmem (%p30_p3), [#allocation3], %s404_s22 }
  0x11   : > { %v162_v0 = vld [vmem:[%s132_s25] sm:$0xff] (%p30_p3) }
  0x12   : > { %v164_v1 = vld [vmem:[%s132_s25 + $0x20] sm:$0xff] (%p30_p3)  ;;  %163 = vst [vmem:[%s130_s26] sm:$0xff] (%p30_p3), %v162_v0 }
  0x13   : > { %165 = vst [vmem:[%s130_s26 + $0x8] sm:$0xff] (%p30_p3), %v164_v1 }
  0x15 PF: > { %p406_p5 = scmp.ge.s32.totalorder %s550_s14, 1  ;;  %p170_p6 = scmp.lt.s32.totalorder %s550_s14, 5 }
  0x17   : > { %p171_p7 = pnand %p406_p5, %p170_p6 }
  0x18   : > { %s177_s27 = sand.u32 (!%p171_p7), 1, %s542_s12   ;;  %p408_p8 = scmp.ne.s32.totalorder (!%p171_p7), %s589_s15, 0 }
  0x19   : > { %174 = sbr.rel (%p171_p7) target bundleno = 345 (0x159), region = 66  ;;  %s407_s28 = sshll.u32 (!%p171_p7), %s177_s27, 4 }
  0x1a   : > { %s179_s29 = scalar_lea.vmem (!%p171_p7), [#allocation3], %s407_s28 }
  0x20   : > { %199 = sbr.rel (%p408_p8) target bundleno = 39 (0x27), region = 74  ;;  %v552_v2 = vmov (!%p408_p8), 0.0  }
  0x21   : > { %200 = vst [vmem:[#allocation2] sm:$0x3] (!%p408_p8), %v552_v2 }
  0x27 PF: > { %v202_v3 = vld [vmem:[%s179_s29] sm:$0xff]  ;;  %v203_v4 = vld [vmem:[%s179_s29 + $0x8] sm:$0xff]  ;;  %vm218_vm0 = vcmask 1041409   ;;  %p409_p9 = scmp.ne.s32.totalorder %s589_s15, 3 }
  0x28   : > { %v204_v5 = vrot.slane %v202_v3, 4  ;;  %v210_v6 = vrot.slane %v203_v4, 4  ;;  %v201_v15 = vld [vmem:[#allocation2] sm:$0x3]  ;;  %v553_v21 = vmov (!%p409_p9), 0.0   ;;  %v487_v22 = vld [vmem:[%s668_s1 + $0x8] sm:$0xff] (!%p409_p9)  }
  0x29   : > { %v486_v20 = vld [vmem:[%s668_s1] sm:$0xff] (!%p409_p9)   ;;  %432 = vmatprep.subr.bf16.mxu0 (!%p409_p9), %v553_v21  ;;  %vm554_vm1 = vmmov (!%p409_p9), 0   ;;  %v488_v23 = vld [vmem:[%s668_s1 + $0x10] sm:$0xff] (!%p409_p9)   ;;  %v489_v24 = vld [vmem:[%s668_s1 + $0x18] sm:$0xff] (!%p409_p9)  }
  0x2a   : > { %v205_v7 = vadd.f32 %v204_v5, %v202_v3  ;;  %v211_v8 = vadd.f32 %v210_v6, %v203_v4  ;;  %433 = vmatpush3.bf16.msra.mxu0 (!%p409_p9), %v486_v20  ;;  %448 = vmatprep.mubr.msk.bf16.mxu0 (!%p409_p9), %vm554_vm1, %v553_v21  ;;  %v490_v25 = vld [vmem:[%s668_s1 + $0x20] sm:$0xff] (!%p409_p9)   ;;  %v491_v26 = vld [vmem:[%s668_s1 + $0x28] sm:$0xff] (!%p409_p9)   ;;  %v492_v27 = vld [vmem:[%s668_s1 + $0x30] sm:$0xff] (!%p409_p9)  }
  0x2b   : > { %434 = vmatprep.subr.bf16.mxu0 (!%p409_p9), %v553_v21  ;;  %v493_v30 = vld [vmem:[%s668_s1 + $0x38] sm:$0xff] (!%p409_p9)   ;;  %v410_v32 = vld [vmem:[%s669_s2] ss:$0 sm:$0xff] (!%p409_p9) }
  0x2c   : > { %v206_v9 = vrot.slane %v205_v7, 2  ;;  %v212_v10 = vrot.slane %v211_v8, 2 }
  0x2e   : > { %v207_v11 = vadd.f32 %v206_v9, %v205_v7  ;;  %v213_v12 = vadd.f32 %v212_v10, %v211_v8  ;;  %435 = vmatpush3.bf16.msra.mxu0 (!%p409_p9), %v487_v22 }
  0x2f   : > { %436 = vmatprep.subr.bf16.mxu0 (!%p409_p9), %v553_v21 }
  0x30   : > { %v208_v13 = vrot.slane %v207_v11, 1  ;;  %v214_v14 = vrot.slane %v213_v12, 1 }
  0x31   : > { %226 = sbr.rel (%p409_p9) target bundleno = 320 (0x140), region = 78 }
  0x32   : > { %v209_v16 = vadd.f32 %v208_v13, %v207_v11  ;;  %v215_v17 = vadd.f32 %v214_v14, %v213_v12  ;;  %437 = vmatpush3.bf16.msra.mxu0 (!%p409_p9), %v488_v23 }
  0x33   : > { %438 = vmatprep.subr.bf16.mxu0 (!%p409_p9), %v553_v21 }
  0x34   : > { %v219_v18 = vsel %vm218_vm0, %v215_v17, %v209_v16 }
  0x35   : > { %v221_v19 = vadd.f32 %v219_v18, %v201_v15 }
  0x36   : > { %439 = vmatpush3.bf16.msra.mxu0 (!%p409_p9), %v489_v24 }
  0x37   : > { %222 = vst [vmem:[#allocation2] sm:$0x3] %v221_v19  ;;  %440 = vmatprep.subr.bf16.mxu0 (!%p409_p9), %v553_v21 }
  0x3a   : > { %441 = vmatpush3.bf16.msra.mxu0 %v490_v25 }
  0x3b   : > { %442 = vmatprep.subr.bf16.mxu0 %v553_v21 }
  0x3e   : > { %443 = vmatpush3.bf16.msra.mxu0 %v491_v26  ;;  %v227_v28 = vld [vmem:[#allocation2] sm:$0x3] }
  0x3f   : > { %444 = vmatprep.subr.bf16.mxu0 %v553_v21  ;;  %v228_v29 = vmul.f32 0.04, %v227_v28 }
  0x41   : > { %v229_v31 = vpack.c.bf16 %v228_v29, %v228_v29 }
  0x42   : > { %445 = vmatpush3.bf16.msra.mxu0 %v492_v27 }
  0x43   : > { %446 = vmatprep.subr.bf16.mxu0 %v553_v21 }
  0x46   : > { %447 = vmatpush3.bf16.msra.mxu0 %v493_v30 }
  0x49   : > { %449 = vmatmul.mubr.bf16.vlgmr.msra.gmra.mrb[0].mxu0 %v229_v31 }
 0x11c   : > { %v335_v33 = vpop.f32.mrb[0].mxu0 }
 0x11d   : > { %v336_v34 = vadd.f32 %v410_v32, %v335_v33  ;;  %v450_v35 = vpop.f32.mrb[1].mxu0 }
 0x11e   : > { %v338_v36 = vpop.f32.mrb[2].mxu0 }
 0x11f   : > { %v341_v37 = vsub.f32 0.0, %v336_v34  ;;  %v451_v38 = vpop.f32.mrb[3].mxu0 }
 0x121   : > { %v342_v39 = vmul.f32 1.442695, %v341_v37 }
 0x123   : > { %494 = vpow2.f32 %v342_v39 }
 0x12d   : > { %v495_v40 = vpop.eup %494 }
 0x12e   : > { %v344_v41 = vadd.f32 1.0, %v495_v40 }
 0x130   : > { %496 = vrcp.f32 %v344_v41 }
 0x13a   : > { %v497_v42 = vpop.eup %496 }
 0x13b   : > { %v346_v43 = vmax.f32 %v497_v42, 0.0 }
 0x13d   : > { %v347_v44 = vmin.f32 %v346_v43, 1.0 }
 0x13f   : > { %348 = vst [vmem:[#allocation4] sm:$0x3] %v347_v44 }
 0x140 PF: > { %p456_p10 = scmp.eq.s32.totalorder %s589_s15, 3  ;;  %s555_s25 = smov [#allocation4]  }
 0x141   : > { %s356_s26 = sshll.u32 %s555_s25, 4  ;;  %s357_s26 = int_to_ptr.vmem [resolvable:$true] %s356_s26 }
 0x142   : > { %s498_s27 = scalar_lea.vmem %s357_s26, 32  ;;  %p505_p0 = scmp.lt.s32.totalorder %s357_s26, %s357_s26 }
 0x143   : > { %p499_p11 = scmp.ne.s32.totalorder %s357_s26, %s498_s27  ;;  %p506_p1 = scmp.lt.s32.totalorder %s498_s27, %s498_s27 }
 0x145   : > { %p500_p12 = pnand %p499_p11, %p456_p10  ;;  %p507_p2 = por %p506_p1, %p505_p0 }
 0x147   : > { %p501_p13 = pneg %p500_p12 }
 0x149   : > { %p508_p3 = pnand %p507_p2, %p501_p13 }
 0x14b   : > { %511 = shalt.err (!%p508_p3)
}
 0x14c   : > { %s512_s30 = scalar_lea.hbm %s670_s3, 32 }
 0x14d   : > { %p513_p4 = scmp.ne.s32.totalorder %s670_s3, %s512_s30  ;;  %p518_p7 = scmp.lt.u32.totalorder %s512_s30, %s670_s3 }
 0x14f   : > { %p514_p5 = pnand %p513_p4, %p456_p10 }
 0x151   : > { %p515_p6 = pneg %p514_p5 }
 0x153   : > { %p520_p8 = pnand %p518_p7, %p515_p6 }
 0x155   : > { %523 = shalt.err (!%p520_p8)
}
 0x156   : > { %453 = dma.vmem_to_hbm [thread:$0]  (%p456_p10), %s357_s26, 32, %s670_s3, [#allocation5]  }
 0x157   : > { %537 = dma.done.wait (%p456_p10), [#allocation5], 32  }
 0x158   : > { %539 = vsyncadd (%p456_p10), [#allocation5], 4294967264 }
 0x159 PF: > { %p11_p9 = scmp.ge.s32.totalorder %s591_s16, 6   ;;  %s671_s12 = smov %s546_s13 }
 0x15a   : > { %s672_s13 = smov %s598_s19  ;;  %s673_s14 = smov %s591_s16 }
 0x15b   :  { %13 = sbr.rel (!%p11_p9) target bundleno = 2 (0x2), region = 110 }
 0x162   :  { %369 = vsyncpa [#allocation5], 1 }
 0x163   :  { %371 = vsyncpa [#allocation5 + $0x1], 1 }

// kernel: fine_tuned_inception_v3_forward.4
= control target key start
LH: loop header
LB: loop body
LE: loop exit
PB: predicated region body
PF: predicated region fallthrough
CT: control target
= control target key end

     0   :  { %s2255_s12 = smov 0   ;;  %s2599_s0 = inlined_call_operand.vmem [shape: f32[2,72,128], index: 0, kind: input, shape index: {}]   ;;  %s2600_s1 = inlined_call_operand.vmem [shape: bf16[9,128,128], index: 1, kind: input, shape index: {}]   ;;  %s2601_s2 = inlined_call_operand.vmem [shape: f32[1,128], index: 2, kind: input, shape index: {}]   ;;  %s2602_s3 = inlined_call_operand.vmem [shape: f32[2,56,128], index: 3, kind: output, shape index: {}]  }
   0x1 LB: > { %s1563_s13 = sadd.s32 4294967295, %s2233_s12   ;;  %p1567_p0 = scmp.ge.s32.totalorder %s2233_s12, 1  ;;  %s2233_s12 = sphi %s2255_s12, %s13_s12  }
   0x2   : > { %p137_p1 = scmp.lt.s32.totalorder %s2233_s12, 3 }
   0x4   : > { %p138_p2 = pnand %p1567_p0, %p137_p1 }
   0x5   : > { %v2155_v0 = vld [vmem:[%s2600_s1 + $0x40] sm:$0xff] (!%p138_p2)   ;;  %p161_p3 = scmp.lt.s32.totalorder (!%p138_p2), %s1563_s13, 1  ;;  %v2157_v2 = vld [vmem:[%s2600_s1 + $0x48] sm:$0xff] (!%p138_p2)   ;;  %v2159_v4 = vld [vmem:[%s2600_s1 + $0x50] sm:$0xff] (!%p138_p2)  }
   0x6   : > { %141 = sbr.rel (%p138_p2) target bundleno = 389 (0x185), region = 32  ;;  %v2156_v1 = vld [vmem:[%s2600_s1 + $0x100] sm:$0xff] (!%p138_p2)   ;;  %1881 = vmatprep.subr.bf16.mxu1 (!%p138_p2), %v2155_v0  ;;  %v2158_v3 = vld [vmem:[%s2600_s1 + $0x108] sm:$0xff] (!%p138_p2)   ;;  %v2160_v5 = vld [vmem:[%s2600_s1 + $0x110] sm:$0xff] (!%p138_p2)  }
   0x7   : > { %1977 = vmatprep.subr.bf16.mxu0 (!%p138_p2), %v2156_v1  ;;  %1882 = vmatpush3.bf16.msra.mxu1 (!%p138_p2), %v2155_v0  ;;  %v2161_v6 = vld [vmem:[%s2600_s1 + $0x58] sm:$0xff] (!%p138_p2)   ;;  %v2163_v8 = vld [vmem:[%s2600_s1 + $0x60] sm:$0xff] (!%p138_p2)   ;;  %v2165_v10 = vld [vmem:[%s2600_s1 + $0x68] sm:$0xff] (!%p138_p2)  }
   0x8   : > { %1978 = vmatpush3.bf16.msra.mxu0 (!%p138_p2), %v2156_v1  ;;  %1883 = vmatprep.subr.bf16.mxu1 (!%p138_p2), %v2157_v2  ;;  %v2162_v7 = vld [vmem:[%s2600_s1 + $0x118] sm:$0xff] (!%p138_p2)   ;;  %v2164_v9 = vld [vmem:[%s2600_s1 + $0x120] sm:$0xff] (!%p138_p2)   ;;  %v2166_v13 = vld [vmem:[%s2600_s1 + $0x128] sm:$0xff] (!%p138_p2)  }
   0x9   : > { %1979 = vmatprep.subr.bf16.mxu0 (!%p138_p2), %v2158_v3  ;;  %v2167_v18 = vld [vmem:[%s2600_s1 + $0x70] sm:$0xff] (!%p138_p2)   ;;  %v2169_v20 = vld [vmem:[%s2600_s1 + $0x78] sm:$0xff] (!%p138_p2)   ;;  %v2171_v23 = vld [vmem:[%s2600_s1] sm:$0xff] (!%p138_p2)  }
   0xa   : > { %v2168_v19 = vld [vmem:[%s2600_s1 + $0x130] sm:$0xff] (!%p138_p2)   ;;  %v2170_v21 = vld [vmem:[%s2600_s1 + $0x138] sm:$0xff] (!%p138_p2)   ;;  %v2172_v27 = vld [vmem:[%s2600_s1 + $0x140] sm:$0xff] (!%p138_p2)  }
   0xb   : > { %1884 = vmatpush3.bf16.msra.mxu1 (!%p138_p2), %v2157_v2  ;;  %v2173_v34 = vld [vmem:[%s2600_s1 + $0x8] sm:$0xff] (!%p138_p2)   ;;  %v2175_v41 = vld [vmem:[%s2600_s1 + $0x10] sm:$0xff] (!%p138_p2)   ;;  %v2177_v46 = vld [vmem:[%s2600_s1 + $0x18] sm:$0xff] (!%p138_p2)  }
   0xc   : > { %1980 = vmatpush3.bf16.msra.mxu0 (!%p138_p2), %v2158_v3  ;;  %1885 = vmatprep.subr.bf16.mxu1 (!%p138_p2), %v2159_v4  ;;  %v2174_v35 = vld [vmem:[%s2600_s1 + $0x148] sm:$0xff] (!%p138_p2)   ;;  %v2176_v42 = vld [vmem:[%s2600_s1 + $0x150] sm:$0xff] (!%p138_p2)   ;;  %v2178_v47 = vld [vmem:[%s2600_s1 + $0x158] sm:$0xff] (!%p138_p2)  }
   0xd   : > { %s2604_s13 = smov (!%p161_p3, %s1563_s13), 1  ;;  %1981 = vmatprep.subr.bf16.mxu0 %v2160_v5  ;;  %v2179_v50 = vld [vmem:[%s2600_s1 + $0x20] sm:$0xff]   ;;  %v2181_v52 = vld [vmem:[%s2600_s1 + $0x28] sm:$0xff]   ;;  %v2183_v54 = vld [vmem:[%s2600_s1 + $0x30] sm:$0xff]  }
   0xe   : > { %s2145_s30 = smul.u32 72, %s2604_s13  ;;  %v2180_v51 = vld [vmem:[%s2600_s1 + $0x160] sm:$0xff]   ;;  %v2182_v53 = vld [vmem:[%s2600_s1 + $0x168] sm:$0xff]   ;;  %v2184_v55 = vld [vmem:[%s2600_s1 + $0x170] sm:$0xff]  }
   0xf   : > { %1886 = vmatpush3.bf16.msra.mxu1 %v2159_v4  ;;  %v2185_v56 = vld [vmem:[%s2600_s1 + $0x38] sm:$0xff]   ;;  %v2187_v58 = vld [vmem:[%s2600_s1 + $0x80] sm:$0xff]   ;;  %v2189_v62 = vld [vmem:[%s2600_s1 + $0x88] sm:$0xff]  }
  0x10   : > { %1982 = vmatpush3.bf16.msra.mxu0 %v2160_v5  ;;  %1887 = vmatprep.subr.bf16.mxu1 %v2161_v6  ;;  %s2299_s10 = scalar_lea.vmem %s2599_s0, %s2145_s30  ;;  %v2186_v57 = vld [vmem:[%s2600_s1 + $0x178] sm:$0xff]   ;;  %v2188_v59 = vld [vmem:[%s2600_s1 + $0x180] sm:$0xff]   ;;  %v2190_v63 = vld [vmem:[%s2600_s1 + $0x188] sm:$0xff]  }
  0x11   : > { %1983 = vmatprep.subr.bf16.mxu0 %v2162_v7  ;;  %v199_v11 = vld [vmem:[%s2299_s10 + $0x1] sm:$0xff]  ;;  %v2306_v12 = vld [vmem:[%s2299_s10 + $0x9] sm:$0xff]  ;;  %v201_v22 = vld [vmem:[%s2299_s10 + $0x11] sm:$0xff] }
  0x12   : > { %v206_v14 = vpack.c.bf16 %v2306_v12, %v199_v11  ;;  %v2313_v15 = vld [vmem:[%s2299_s10 + $0x8] sm:$0xff]  ;;  %v2316_v16 = vld [vmem:[%s2299_s10 + $0x10] sm:$0xff]  ;;  %v2337_v24 = vld [vmem:[%s2299_s10 + $0x19] sm:$0xff]  ;;  %v899_v49 = vpack.c.bf16 %v201_v22, %v2306_v12 }
  0x13   : > { %1888 = vmatpush3.bf16.msra.mxu1 %v2161_v6  ;;  %v752_v17 = vpack.c.bf16 %v2316_v16, %v2313_v15  ;;  %v2340_v25 = vld [vmem:[%s2299_s10 + $0x18] sm:$0xff]  ;;  %v2343_v26 = vld [vmem:[%s2299_s10 + $0x20] sm:$0xff]  ;;  %v207_v28 = vpack.c.bf16 %v2337_v24, %v201_v22  ;;  %v2355_v31 = vld [vmem:[%s2299_s10 + $0x29] sm:$0xff] }
  0x14   : > { %1984 = vmatpush3.bf16.msra.mxu0 %v2162_v7  ;;  %1889 = vmatprep.subr.bf16.mxu1 %v2163_v8  ;;  %v2350_v29 = vld [vmem:[%s2299_s10 + $0x21] sm:$0xff]  ;;  %v753_v30 = vpack.c.bf16 %v2343_v26, %v2340_v25  ;;  %v2361_v33 = vld [vmem:[%s2299_s10 + $0x30] sm:$0xff]  ;;  %v2372_v37 = vld [vmem:[%s2299_s10 + $0x38] sm:$0xff]  ;;  %v2432_v60 = vpack.c.bf16 %v2340_v25, %v2316_v16 }
  0x15   : > { %1985 = vmatprep.subr.bf16.mxu0 %v2164_v9  ;;  %1897 = vmatprep.mubr.bf16.mxu1 %v206_v14  ;;  %v2358_v32 = vld [vmem:[%s2299_s10 + $0x28] sm:$0xff]  ;;  %v208_v36 = vpack.c.bf16 %v2355_v31, %v2350_v29  ;;  %v1342_v39 = vpack.c.bf16 %v2372_v37, %v2361_v33  ;;  %v2379_v40 = vld [vmem:[%s2299_s10 + $0x31] sm:$0xff]  ;;  %v172_v44 = vld [vmem:[%s2299_s10] sm:$0xff]  ;;  %v755_v45 = vpack.c.bf16 %v2372_v37, %v2372_v37 }
  0x16   : > { %1993 = vmatprep.mubr.bf16.mxu0 %v752_v17  ;;  %v754_v38 = vpack.c.bf16 %v2361_v33, %v2358_v32  ;;  %v209_v43 = vpack.c.bf16 %v2379_v40, %v2379_v40  ;;  %v179_v48 = vpack.c.bf16 %v2313_v15, %v172_v44  ;;  %v900_v61 = vpack.c.bf16 %v2350_v29, %v2337_v24  ;;  %v2191_v2 = vld [vmem:[%s2600_s1 + $0x90] sm:$0xff]   ;;  %v898_v3 = vld [vmem:[%s2299_s10 + $0x39] sm:$0xff]  ;;  %v451_v5 = vld [vmem:[%s2299_s10 + $0x2] sm:$0xff] }
  0x17   : > { %1890 = vmatpush3.bf16.msra.mxu1 %v2163_v8  ;;  %v2444_v0 = vpack.c.bf16 %v2358_v32, %v2343_v26  ;;  %v901_v1 = vpack.c.bf16 %v2379_v40, %v2355_v31  ;;  %v2192_v4 = vld [vmem:[%s2600_s1 + $0x190] sm:$0xff]   ;;  %v182_v7 = vpack.c.bf16 %v2361_v33, %v2361_v33  ;;  %v2193_v11 = vld [vmem:[%s2600_s1 + $0x98] sm:$0xff]   ;;  %v2195_v15 = vld [vmem:[%s2600_s1 + $0xa0] sm:$0xff]  }
  0x18   : > { %1986 = vmatpush3.bf16.msra.mxu0 %v2164_v9  ;;  %1891 = vmatprep.subr.bf16.mxu1 %v2165_v10  ;;  %v452_v6 = vld [vmem:[%s2299_s10 + $0xa] sm:$0xff]  ;;  %v902_v9 = vpack.c.bf16 %v898_v3, %v898_v3  ;;  %v2194_v12 = vld [vmem:[%s2600_s1 + $0x198] sm:$0xff]   ;;  %v2196_v16 = vld [vmem:[%s2600_s1 + $0x1a0] sm:$0xff]  }
  0x19   : > { %1987 = vmatprep.subr.bf16.mxu0 %v2166_v13  ;;  %v1039_v8 = vld [vmem:[%s2299_s10 + $0xe] sm:$0xff]  ;;  %v2202_v22 = vld [vmem:[%s2600_s1 + $0x1b8] sm:$0xff]   ;;  %v2203_v25 = vld [vmem:[%s2600_s1 + $0xc0] sm:$0xff]  }
  0x1a   : > { %v2197_v17 = vld [vmem:[%s2600_s1 + $0xa8] sm:$0xff]   ;;  %v454_v24 = vld [vmem:[%s2299_s10 + $0x1a] sm:$0xff] }
  0x1b   : > { %1892 = vmatpush3.bf16.msra.mxu1 %v2165_v10  ;;  %v1040_v10 = vld [vmem:[%s2299_s10 + $0x16] sm:$0xff]  ;;  %v1041_v26 = vld [vmem:[%s2299_s10 + $0x1e] sm:$0xff]  ;;  %v456_v31 = vld [vmem:[%s2299_s10 + $0x2a] sm:$0xff] }
  0x1c   : > { %1988 = vmatpush3.bf16.msra.mxu0 %v2166_v13  ;;  %1893 = vmatprep.subr.bf16.mxu1 %v2167_v18  ;;  %v458_v13 = vpack.c.bf16 %v452_v6, %v451_v5  ;;  %v1046_v14 = vpack.c.bf16 %v1040_v10, %v1039_v8  ;;  %v1045_v44 = vld [vmem:[%s2299_s10 + $0x3e] sm:$0xff]  ;;  %v1189_v3 = vld [vmem:[%s2299_s10 + $0x27] sm:$0xff]  ;;  %v603_v5 = vld [vmem:[%s2299_s10 + $0x2f] sm:$0xff] }
  0x1d   : > { %1989 = vmatprep.subr.bf16.mxu0 %v2168_v19  ;;  %v607_v8 = vpack.c.bf16 %v603_v5, %v1189_v3  ;;  %v2226_v33 = vld [vmem:[%s2600_s1 + $0x238] sm:$0xff]   ;;  %v1339_v37 = vld [vmem:[%s2299_s10 + $0x40] sm:$0xff] }
  0x1f   : > { %1894 = vmatpush3.bf16.msra.mxu1 %v2167_v18  ;;  %v2198_v18 = vld [vmem:[%s2600_s1 + $0x1a8] sm:$0xff]  }
  0x20   : > { %1990 = vmatpush3.bf16.msra.mxu0 %v2168_v19  ;;  %1895 = vmatprep.subr.bf16.mxu1 %v2169_v20  ;;  %v2199_v19 = vld [vmem:[%s2600_s1 + $0xb0] sm:$0xff]  }
  0x21   : > { %1991 = vmatprep.subr.bf16.mxu0 %v2170_v21 }
  0x23   : > { %1896 = vmatpush3.bf16.msra.mxu1 %v2169_v20  ;;  %v2200_v20 = vld [vmem:[%s2600_s1 + $0x1b0] sm:$0xff]  }
  0x24   : > { %1992 = vmatpush3.bf16.msra.mxu0 %v2170_v21  ;;  %1905 = vmatprep.subr.bf16.mxu1 %v2171_v23  ;;  %v2201_v21 = vld [vmem:[%s2600_s1 + $0xb8] sm:$0xff]  }
  0x25   : > { %2001 = vmatprep.subr.bf16.mxu0 %v2172_v27 }
  0x26   : > { %1898 = vmatmul.mubr.bf16.vlgmr.msra.gmra.mrb[0].mxu1 %v207_v28  ;;  %v2204_v28 = vld [vmem:[%s2600_s1 + $0x1c0] sm:$0xff]  }
  0x27   : > { %1906 = vmatpush3.bf16.msra.mxu1 %v2171_v23  ;;  %1994 = vmatmul.mubr.bf16.vlgmr.msra.gmra.mrb[0].mxu0 %v753_v30  ;;  %v453_v23 = vld [vmem:[%s2299_s10 + $0x12] sm:$0xff]  ;;  %v455_v30 = vld [vmem:[%s2299_s10 + $0x22] sm:$0xff] }
  0x28   : > { %2002 = vmatpush3.bf16.msra.mxu0 %v2172_v27  ;;  %1907 = vmatprep.subr.bf16.mxu1 %v2173_v34  ;;  %v1042_v27 = vld [vmem:[%s2299_s10 + $0x26] sm:$0xff]  ;;  %v459_v29 = vpack.c.bf16 %v454_v24, %v453_v23  ;;  %v460_v40 = vpack.c.bf16 %v456_v31, %v455_v30 }
  0x29   : > { %2003 = vmatprep.subr.bf16.mxu0 %v2174_v35  ;;  %1901 = vmatprep.mubr.bf16.mxu1 %v208_v36  ;;  %v1047_v32 = vpack.c.bf16 %v1042_v27, %v1041_v26  ;;  %v2205_v36 = vld [vmem:[%s2600_s1 + $0xc8] sm:$0xff]  }
  0x2a   : > { %1997 = vmatprep.mubr.bf16.mxu0 %v754_v38  ;;  %v2206_v38 = vld [vmem:[%s2600_s1 + $0x1c8] sm:$0xff]  }
  0x2b   : > { %1908 = vmatpush3.bf16.msra.mxu1 %v2173_v34  ;;  %v1043_v34 = vld [vmem:[%s2299_s10 + $0x2e] sm:$0xff] }
  0x2c   : > { %2004 = vmatpush3.bf16.msra.mxu0 %v2174_v35  ;;  %1909 = vmatprep.subr.bf16.mxu1 %v2175_v41  ;;  %v1044_v35 = vld [vmem:[%s2299_s10 + $0x36] sm:$0xff] }
  0x2d   : > { %2005 = vmatprep.subr.bf16.mxu0 %v2176_v42 }
  0x2e   : > { %1902 = vmatmul.mubr.bf16.gmra.mrb[4].mxu1 %v209_v43  ;;  %v2207_v43 = vld [vmem:[%s2600_s1 + $0xd0] sm:$0xff]  }
  0x2f   : > { %1910 = vmatpush3.bf16.msra.mxu1 %v2175_v41  ;;  %1998 = vmatmul.mubr.bf16.gmra.mrb[4].mxu0 %v755_v45  ;;  %v1048_v41 = vpack.c.bf16 %v1044_v35, %v1043_v34  ;;  %v2208_v45 = vld [vmem:[%s2600_s1 + $0x1d0] sm:$0xff]  }
  0x30   : > { %2006 = vmatpush3.bf16.msra.mxu0 %v2176_v42  ;;  %1911 = vmatprep.subr.bf16.mxu1 %v2177_v46  ;;  %v457_v42 = vld [vmem:[%s2299_s10 + $0x32] sm:$0xff] }
  0x31   : > { %2007 = vmatprep.subr.bf16.mxu0 %v2178_v47  ;;  %1921 = vmatprep.mubr.bf16.mxu1 %v179_v48  ;;  %v599_v48 = vld [vmem:[%s2299_s10 + $0xf] sm:$0xff] }
  0x32   : > { %2017 = vmatprep.mubr.bf16.mxu0 %v899_v49  ;;  %v1049_v49 = vpack.c.bf16 %v1045_v44, %v1045_v44 }
  0x33   : > { %1912 = vmatpush3.bf16.msra.mxu1 %v2177_v46  ;;  %v461_v46 = vpack.c.bf16 %v457_v42, %v457_v42 }
  0x34   : > { %2008 = vmatpush3.bf16.msra.mxu0 %v2178_v47  ;;  %1913 = vmatprep.subr.bf16.mxu1 %v2179_v50  ;;  %v598_v47 = vld [vmem:[%s2299_s10 + $0x7] sm:$0xff] }
  0x35   : > { %2009 = vmatprep.subr.bf16.mxu0 %v2180_v51 }
  0x37   : > { %1914 = vmatpush3.bf16.msra.mxu1 %v2179_v50  ;;  %v600_v50 = vld [vmem:[%s2299_s10 + $0x17] sm:$0xff] }
  0x38   : > { %2010 = vmatpush3.bf16.msra.mxu0 %v2180_v51  ;;  %1915 = vmatprep.subr.bf16.mxu1 %v2181_v52  ;;  %v2209_v51 = vld [vmem:[%s2600_s1 + $0xd8] sm:$0xff]  }
  0x39   : > { %2011 = vmatprep.subr.bf16.mxu0 %v2182_v53 }
  0x3b   : > { %1916 = vmatpush3.bf16.msra.mxu1 %v2181_v52  ;;  %v2210_v52 = vld [vmem:[%s2600_s1 + $0x1d8] sm:$0xff]  }
  0x3c   : > { %2012 = vmatpush3.bf16.msra.mxu0 %v2182_v53  ;;  %1917 = vmatprep.subr.bf16.mxu1 %v2183_v54  ;;  %v605_v53 = vpack.c.bf16 %v599_v48, %v598_v47 }
  0x3d   : > { %2013 = vmatprep.subr.bf16.mxu0 %v2184_v55 }
  0x3f   : > { %1918 = vmatpush3.bf16.msra.mxu1 %v2183_v54  ;;  %v1193_v54 = vpack.c.bf16 %v600_v50, %v599_v48 }
  0x40   : > { %2014 = vmatpush3.bf16.msra.mxu0 %v2184_v55  ;;  %1919 = vmatprep.subr.bf16.mxu1 %v2185_v56  ;;  %v2211_v55 = vld [vmem:[%s2600_s1 + $0xe0] sm:$0xff]  }
  0x41   : > { %2015 = vmatprep.subr.bf16.mxu0 %v2186_v57 }
  0x43   : > { %1920 = vmatpush3.bf16.msra.mxu1 %v2185_v56  ;;  %v2212_v56 = vld [vmem:[%s2600_s1 + $0x1e0] sm:$0xff]  }
  0x44   : > { %2016 = vmatpush3.bf16.msra.mxu0 %v2186_v57  ;;  %1929 = vmatprep.subr.bf16.mxu1 %v2187_v58  ;;  %v2213_v57 = vld [vmem:[%s2600_s1 + $0xe8] sm:$0xff]  }
  0x45   : > { %2025 = vmatprep.subr.bf16.mxu0 %v2188_v59 }
  0x46   : > { %1922 = vmatmul.mubr.bf16.vlgmr.msra.gmra.mrb[0].mxu1 %v2432_v60 }
  0x47   : > { %1930 = vmatpush3.bf16.msra.mxu1 %v2187_v58  ;;  %2018 = vmatmul.mubr.bf16.vlgmr.msra.gmra.mrb[0].mxu0 %v900_v61  ;;  %v2214_v58 = vld [vmem:[%s2600_s1 + $0x1e8] sm:$0xff]   ;;  %v2216_v61 = vld [vmem:[%s2600_s1 + $0x1f0] sm:$0xff]  }
  0x48   : > { %2026 = vmatpush3.bf16.msra.mxu0 %v2188_v59  ;;  %1931 = vmatprep.subr.bf16.mxu1 %v2189_v62  ;;  %v2215_v59 = vld [vmem:[%s2600_s1 + $0xf0] sm:$0xff]  }
  0x49   : > { %2027 = vmatprep.subr.bf16.mxu0 %v2190_v63  ;;  %1925 = vmatprep.mubr.bf16.mxu1 %v2444_v0 }
  0x4a   : > { %2021 = vmatprep.mubr.bf16.mxu0 %v901_v1  ;;  %v601_v1 = vld [vmem:[%s2299_s10 + $0x1f] sm:$0xff] }
  0x4b   : > { %1932 = vmatpush3.bf16.msra.mxu1 %v2189_v62  ;;  %v2217_v62 = vld [vmem:[%s2600_s1 + $0xf8] sm:$0xff]   ;;  %v1194_v6 = vpack.c.bf16 %v1189_v3, %v601_v1 }
  0x4c   : > { %2028 = vmatpush3.bf16.msra.mxu0 %v2190_v63  ;;  %1933 = vmatprep.subr.bf16.mxu1 %v2191_v2  ;;  %v2218_v63 = vld [vmem:[%s2600_s1 + $0x1f8] sm:$0xff]  }
  0x4d   : > { %2029 = vmatprep.subr.bf16.mxu0 %v2192_v4 }
  0x4e   : > { %1926 = vmatmul.mubr.bf16.gmra.mrb[8].mxu1 %v182_v7  ;;  %v2220_v7 = vld [vmem:[%s2600_s1 + $0x208] sm:$0xff]  }
  0x4f   : > { %1934 = vmatpush3.bf16.msra.mxu1 %v2191_v2  ;;  %2022 = vmatmul.mubr.bf16.gmra.mrb[8].mxu0 %v902_v9  ;;  %v2219_v2 = vld [vmem:[%s2600_s1 + $0x200] sm:$0xff]   ;;  %v604_v9 = vld [vmem:[%s2299_s10 + $0x37] sm:$0xff] }
  0x50   : > { %2030 = vmatpush3.bf16.msra.mxu0 %v2192_v4  ;;  %1935 = vmatprep.subr.bf16.mxu1 %v2193_v11  ;;  %v606_v4 = vpack.c.bf16 %v601_v1, %v600_v50  ;;  %v1195_v10 = vpack.c.bf16 %v604_v9, %v603_v5 }
  0x51   : > { %2031 = vmatprep.subr.bf16.mxu0 %v2194_v12  ;;  %1945 = vmatprep.mubr.bf16.mxu1 %v458_v13  ;;  %v608_v13 = vpack.c.bf16 %v604_v9, %v604_v9 }
  0x52   : > { %2041 = vmatprep.mubr.bf16.mxu0 %v1046_v14 }
  0x53   : > { %1936 = vmatpush3.bf16.msra.mxu1 %v2193_v11  ;;  %v2221_v11 = vld [vmem:[%s2600_s1 + $0x210] sm:$0xff]  }
  0x54   : > { %2032 = vmatpush3.bf16.msra.mxu0 %v2194_v12  ;;  %1937 = vmatprep.subr.bf16.mxu1 %v2195_v15  ;;  %v1192_v12 = vld [vmem:[%s2299_s10 + $0x3f] sm:$0xff]  ;;  %s2146_s10 = smul.u32 56, %s2604_s13 }
  0x55   : > { %2033 = vmatprep.subr.bf16.mxu0 %v2196_v16  ;;  %v1196_v14 = vpack.c.bf16 %v1192_v12, %v1192_v12 }
  0x56   : > { %s170_s13 = scalar_lea.vmem %s2602_s3, %s2146_s10 }
  0x57   : > { %1938 = vmatpush3.bf16.msra.mxu1 %v2195_v15  ;;  %v2222_v15 = vld [vmem:[%s2600_s1 + $0x218] sm:$0xff]  }
  0x58   : > { %2034 = vmatpush3.bf16.msra.mxu0 %v2196_v16  ;;  %1939 = vmatprep.subr.bf16.mxu1 %v2197_v17  ;;  %v2223_v16 = vld [vmem:[%s2600_s1 + $0x220] sm:$0xff]  }
  0x59   : > { %2035 = vmatprep.subr.bf16.mxu0 %v2198_v18 }
  0x5b   : > { %1940 = vmatpush3.bf16.msra.mxu1 %v2197_v17  ;;  %v2224_v17 = vld [vmem:[%s2600_s1 + $0x228] sm:$0xff]  }
  0x5c   : > { %2036 = vmatpush3.bf16.msra.mxu0 %v2198_v18  ;;  %1941 = vmatprep.subr.bf16.mxu1 %v2199_v19 }
  0x5d   : > { %2037 = vmatprep.subr.bf16.mxu0 %v2200_v20 }
  0x5f   : > { %1942 = vmatpush3.bf16.msra.mxu1 %v2199_v19 }
  0x60   : > { %2038 = vmatpush3.bf16.msra.mxu0 %v2200_v20  ;;  %1943 = vmatprep.subr.bf16.mxu1 %v2201_v21 }
  0x61   : > { %2039 = vmatprep.subr.bf16.mxu0 %v2202_v22 }
  0x63   : > { %1944 = vmatpush3.bf16.msra.mxu1 %v2201_v21 }
  0x64   : > { %2040 = vmatpush3.bf16.msra.mxu0 %v2202_v22  ;;  %1953 = vmatprep.subr.bf16.mxu1 %v2203_v25 }
  0x65   : > { %2049 = vmatprep.subr.bf16.mxu0 %v2204_v28 }
  0x66   : > { %1946 = vmatmul.mubr.bf16.vlgmr.msra.gmra.mrb[0].mxu1 %v459_v29 }
  0x67   : > { %1954 = vmatpush3.bf16.msra.mxu1 %v2203_v25  ;;  %2042 = vmatmul.mubr.bf16.vlgmr.msra.gmra.mrb[0].mxu0 %v1047_v32 }
  0x68   : > { %2050 = vmatpush3.bf16.msra.mxu0 %v2204_v28  ;;  %1955 = vmatprep.subr.bf16.mxu1 %v2205_v36 }
  0x69   : > { %2051 = vmatprep.subr.bf16.mxu0 %v2206_v38  ;;  %1949 = vmatprep.mubr.bf16.mxu1 %v460_v40 }
  0x6a   : > { %2045 = vmatprep.mubr.bf16.mxu0 %v1048_v41 }
  0x6b   : > { %1956 = vmatpush3.bf16.msra.mxu1 %v2205_v36 }
  0x6c   : > { %2052 = vmatpush3.bf16.msra.mxu0 %v2206_v38  ;;  %1957 = vmatprep.subr.bf16.mxu1 %v2207_v43 }
  0x6d   : > { %2053 = vmatprep.subr.bf16.mxu0 %v2208_v45 }
  0x6e   : > { %1950 = vmatmul.mubr.bf16.gmra.mrb[12].mxu1 %v461_v46 }
  0x6f   : > { %1958 = vmatpush3.bf16.msra.mxu1 %v2207_v43  ;;  %2046 = vmatmul.mubr.bf16.gmra.mrb[12].mxu0 %v1049_v49 }
  0x70   : > { %2054 = vmatpush3.bf16.msra.mxu0 %v2208_v45  ;;  %1959 = vmatprep.subr.bf16.mxu1 %v2209_v51 }
  0x71   : > { %2055 = vmatprep.subr.bf16.mxu0 %v2210_v52  ;;  %1969 = vmatprep.mubr.bf16.mxu1 %v605_v53 }
  0x72   : > { %2065 = vmatprep.mubr.bf16.mxu0 %v1193_v54 }
  0x73   : > { %1960 = vmatpush3.bf16.msra.mxu1 %v2209_v51 }
  0x74   : > { %2056 = vmatpush3.bf16.msra.mxu0 %v2210_v52  ;;  %1961 = vmatprep.subr.bf16.mxu1 %v2211_v55 }
  0x75   : > { %2057 = vmatprep.subr.bf16.mxu0 %v2212_v56 }
  0x77   : > { %1962 = vmatpush3.bf16.msra.mxu1 %v2211_v55 }
  0x78   : > { %2058 = vmatpush3.bf16.msra.mxu0 %v2212_v56  ;;  %1963 = vmatprep.subr.bf16.mxu1 %v2213_v57 }
  0x79   : > { %2059 = vmatprep.subr.bf16.mxu0 %v2214_v58 }
  0x7b   : > { %1964 = vmatpush3.bf16.msra.mxu1 %v2213_v57 }
  0x7c   : > { %2060 = vmatpush3.bf16.msra.mxu0 %v2214_v58  ;;  %1965 = vmatprep.subr.bf16.mxu1 %v2215_v59 }
  0x7d   : > { %2061 = vmatprep.subr.bf16.mxu0 %v2216_v61 }
  0x7f   : > { %1966 = vmatpush3.bf16.msra.mxu1 %v2215_v59 }
  0x80   : > { %2062 = vmatpush3.bf16.msra.mxu0 %v2216_v61  ;;  %1967 = vmatprep.subr.bf16.mxu1 %v2217_v62 }
  0x81   : > { %2063 = vmatprep.subr.bf16.mxu0 %v2218_v63 }
  0x83   : > { %1968 = vmatpush3.bf16.msra.mxu1 %v2217_v62 }
  0x84   : > { %2064 = vmatpush3.bf16.msra.mxu0 %v2218_v63  ;;  %2097 = vmatprep.subr.bf16.mxu1 %v2219_v2 }
  0x85   : > { %2073 = vmatprep.subr.bf16.mxu0 %v2219_v2 }
  0x86   : > { %1970 = vmatmul.mubr.bf16.vlgmr.msra.gmra.mrb[0].mxu1 %v606_v4 }
  0x87   : > { %2066 = vmatmul.mubr.bf16.vlgmr.msra.gmra.mrb[0].mxu0 %v1194_v6  ;;  %2105 = vmatpush3.bf16.msra.mxu1 %v2219_v2 }
  0x88   : > { %2074 = vmatpush3.bf16.msra.mxu0 %v2219_v2  ;;  %2098 = vmatprep.subr.bf16.mxu1 %v2220_v7 }
  0x89   : > { %2075 = vmatprep.subr.bf16.mxu0 %v2220_v7  ;;  %1973 = vmatprep.mubr.bf16.mxu1 %v607_v8 }
  0x8a   : > { %2069 = vmatprep.mubr.bf16.mxu0 %v1195_v10 }
  0x8b   : > { %2106 = vmatpush3.bf16.msra.mxu1 %v2220_v7 }
  0x8c   : > { %2076 = vmatpush3.bf16.msra.mxu0 %v2220_v7  ;;  %2099 = vmatprep.subr.bf16.mxu1 %v2221_v11 }
  0x8d   : > { %2077 = vmatprep.subr.bf16.mxu0 %v2221_v11 }
  0x8e   : > { %1974 = vmatmul.mubr.bf16.gmra.mrb[16].mxu1 %v608_v13 }
  0x8f   : > { %2107 = vmatpush3.bf16.msra.mxu1 %v2221_v11  ;;  %2070 = vmatmul.mubr.bf16.gmra.mrb[16].mxu0 %v1196_v14 }
  0x90   : > { %2078 = vmatpush3.bf16.msra.mxu0 %v2221_v11  ;;  %2100 = vmatprep.subr.bf16.mxu1 %v2222_v15 }
  0x91   : > { %2079 = vmatprep.subr.bf16.mxu0 %v2222_v15  ;;  %2089 = vmatprep.mubr.bf16.mxu0 %v2432_v60  ;;  %v2225_v60 = vld [vmem:[%s2600_s1 + $0x230] sm:$0xff]  }
  0x92   : > { %2093 = vmatprep.mubr.bf16.mxu1 %v1342_v39  ;;  %v1343_v39 = vpack.c.bf16 %v1339_v37, %v1339_v37 }
  0x93   : > { %2108 = vmatpush3.bf16.msra.mxu1 %v2222_v15 }
  0x94   : > { %2080 = vmatpush3.bf16.msra.mxu0 %v2222_v15  ;;  %2101 = vmatprep.subr.bf16.mxu1 %v2223_v16  ;;  %v1770_v15 = vld [vmem:[%s2601_s2] ss:$0 sm:$0xff] }
  0x95   : > { %2081 = vmatprep.subr.bf16.mxu0 %v2223_v16 }
  0x97   : > { %2109 = vmatpush3.bf16.msra.mxu1 %v2223_v16 }
  0x98   : > { %2082 = vmatpush3.bf16.msra.mxu0 %v2223_v16  ;;  %2102 = vmatprep.subr.bf16.mxu1 %v2224_v17 }
  0x99   : > { %2083 = vmatprep.subr.bf16.mxu0 %v2224_v17 }
  0x9b   : > { %2110 = vmatpush3.bf16.msra.mxu1 %v2224_v17 }
  0x9c   : > { %2084 = vmatpush3.bf16.msra.mxu0 %v2224_v17  ;;  %2103 = vmatprep.subr.bf16.mxu1 %v2225_v60 }
  0x9d   : > { %2085 = vmatprep.subr.bf16.mxu0 %v2225_v60 }
  0x9f   : > { %2111 = vmatpush3.bf16.msra.mxu1 %v2225_v60 }
  0xa0   : > { %2086 = vmatpush3.bf16.msra.mxu0 %v2225_v60  ;;  %2104 = vmatprep.subr.bf16.mxu1 %v2226_v33 }
  0xa1   : > { %2087 = vmatprep.subr.bf16.mxu0 %v2226_v33 }
  0xa3   : > { %2112 = vmatpush3.bf16.msra.mxu1 %v2226_v33 }
  0xa4   : > { %2088 = vmatpush3.bf16.msra.mxu0 %v2226_v33 }
  0xa6   : > { %2094 = vmatmul.mubr.bf16.vlgmr.msra.gmra.mrb[20].mxu1 %v1343_v39 }
  0xa7   : > { %2090 = vmatmul.mubr.bf16.vlgmr.msra.gmra.mrb[0].mxu0 %v2444_v0 }
 0x101   : > { %v1903_v18 = vpop.f32.mrb[4].mxu1 }
 0x102   : > { %v1999_v19 = vpop.f32.mrb[4].mxu0  ;;  %v325_v20 = vpop.f32.mrb[5].mxu1 }
 0x103   : > { %v871_v21 = vpop.f32.mrb[5].mxu0  ;;  %v1904_v22 = vpop.f32.mrb[6].mxu1 }
 0x104   : > { %v2000_v23 = vpop.f32.mrb[6].mxu0  ;;  %v328_v24 = vpop.f32.mrb[7].mxu1 }
 0x105   : > { %v874_v25 = vpop.f32.mrb[7].mxu0 }
 0x121   : > { %v1927_v26 = vpop.f32.mrb[8].mxu1 }
 0x122   : > { %v446_v27 = vadd.f32 %v1927_v26, %v1903_v18  ;;  %v437_v28 = vpop.f32.mrb[9].mxu1  ;;  %v2023_v29 = vpop.f32.mrb[8].mxu0 }
 0x123   : > { %v438_v30 = vadd.f32 %v437_v28, %v325_v20  ;;  %v1928_v31 = vpop.f32.mrb[10].mxu1  ;;  %v1018_v32 = vpop.f32.mrb[9].mxu0 }
 0x124   : > { %v440_v34 = vpop.f32.mrb[11].mxu1  ;;  %v2024_v35 = vpop.f32.mrb[10].mxu0 }
 0x125   : > { %v441_v36 = vadd.f32 %v440_v34, %v328_v24  ;;  %v1021_v38 = vpop.f32.mrb[11].mxu0 }
 0x141   : > { %v1951_v0 = vpop.f32.mrb[12].mxu1 }
 0x142   : > { %v597_v40 = vadd.f32 %v1951_v0, %v446_v27  ;;  %v577_v41 = vpop.f32.mrb[13].mxu1  ;;  %v2047_v42 = vpop.f32.mrb[12].mxu0 }
 0x143   : > { %v595_v43 = vadd.f32 %v577_v41, %v438_v30  ;;  %v1952_v44 = vpop.f32.mrb[14].mxu1  ;;  %v1165_v45 = vpop.f32.mrb[13].mxu0 }
 0x144   : > { %v580_v46 = vpop.f32.mrb[15].mxu1  ;;  %v2048_v47 = vpop.f32.mrb[14].mxu0 }
 0x145   : > { %v596_v48 = vadd.f32 %v580_v46, %v441_v36  ;;  %v1168_v49 = vpop.f32.mrb[15].mxu0 }
 0x159   : > { %v1971_v50 = vpop.f32.mrb[0].mxu1 }
 0x15a   : > { %v708_v51 = vpop.f32.mrb[1].mxu1 }
 0x15b   : > { %v1972_v52 = vpop.f32.mrb[2].mxu1 }
 0x15c   : > { %v711_v53 = vpop.f32.mrb[3].mxu1 }
 0x161   : > { %v1975_v54 = vpop.f32.mrb[16].mxu1 }
 0x162   : > { %v744_v55 = vadd.f32 %v1975_v54, %v597_v40  ;;  %v724_v56 = vpop.f32.mrb[17].mxu1  ;;  %v2071_v57 = vpop.f32.mrb[16].mxu0 }
 0x163   : > { %v742_v58 = vadd.f32 %v724_v56, %v595_v43  ;;  %v1976_v59 = vpop.f32.mrb[18].mxu1  ;;  %v1312_v61 = vpop.f32.mrb[17].mxu0 }
 0x164   : > { %v891_v62 = vadd.f32 %v1999_v19, %v744_v55  ;;  %v727_v63 = vpop.f32.mrb[19].mxu1  ;;  %v2072_v1 = vpop.f32.mrb[18].mxu0 }
 0x165   : > { %v889_v2 = vadd.f32 %v871_v21, %v742_v58  ;;  %v743_v3 = vadd.f32 %v727_v63, %v596_v48  ;;  %v1315_v4 = vpop.f32.mrb[19].mxu0 }
 0x166   : > { %v1038_v5 = vadd.f32 %v2023_v29, %v891_v62 }
 0x167   : > { %v890_v6 = vadd.f32 %v874_v25, %v743_v3  ;;  %v1036_v7 = vadd.f32 %v1018_v32, %v889_v2 }
 0x168   : > { %v1185_v8 = vadd.f32 %v2047_v42, %v1038_v5 }
 0x169   : > { %v1183_v9 = vadd.f32 %v1165_v45, %v1036_v7  ;;  %v1037_v10 = vadd.f32 %v1021_v38, %v890_v6 }
 0x16a   : > { %v1332_v11 = vadd.f32 %v2071_v57, %v1185_v8 }
 0x16b   : > { %v1330_v12 = vadd.f32 %v1312_v61, %v1183_v9  ;;  %v1184_v13 = vadd.f32 %v1168_v49, %v1037_v10 }
 0x16d   : > { %v1331_v14 = vadd.f32 %v1315_v4, %v1184_v13 }
 0x179   : > { %v2095_v16 = vpop.f32.mrb[20].mxu1 }
 0x17a   : > { %v2091_v17 = vpop.f32.mrb[0].mxu0  ;;  %v1479_v60 = vadd.f32 %v2095_v16, %v1332_v11  ;;  %v1459_v33 = vpop.f32.mrb[21].mxu1 }
 0x17b   : > { %v2113_v37 = vadd.f32 %v2091_v17, %v1971_v50  ;;  %v1443_v39 = vpop.f32.mrb[1].mxu0  ;;  %v1477_v18 = vadd.f32 %v1459_v33, %v1330_v12  ;;  %v2096_v19 = vpop.f32.mrb[22].mxu1 }
 0x17c   : > { %v1493_v20 = vadd.f32 %v1770_v15, %v1479_v60  ;;  %v2114_v21 = vadd.f32 %v1443_v39, %v708_v51  ;;  %v2092_v22 = vpop.f32.mrb[2].mxu0  ;;  %v1462_v23 = vpop.f32.mrb[23].mxu1 }
 0x17d   : > { %v1489_v24 = vadd.f32 %v2113_v37, %v1770_v15  ;;  %v1491_v25 = vadd.f32 %v1770_v15, %v1477_v18  ;;  %v2115_v26 = vadd.f32 %v2092_v22, %v1972_v52  ;;  %v1446_v27 = vpop.f32.mrb[3].mxu0  ;;  %v1478_v28 = vadd.f32 %v1462_v23, %v1331_v14 }
 0x17e   : > { %v1500_v29 = vmax.f32 %v1493_v20, 0.0  ;;  %v1487_v30 = vadd.f32 %v2114_v21, %v1770_v15  ;;  %v2116_v31 = vadd.f32 %v1446_v27, %v711_v53 }
 0x17f   : > { %v1496_v32 = vmax.f32 %v1489_v24, 0.0  ;;  %v1498_v34 = vmax.f32 %v1491_v25, 0.0  ;;  %v1490_v35 = vadd.f32 %v2115_v26, %v1770_v15  ;;  %v1492_v36 = vadd.f32 %v1770_v15, %v1478_v28 }
 0x180   : > { %1507 = vst [vmem:[%s170_s13 + $0x30] sm:$0xff] %v1500_v29  ;;  %v1494_v38 = vmax.f32 %v1487_v30, 0.0  ;;  %v1488_v0 = vadd.f32 %v2116_v31, %v1770_v15 }
 0x181   : > { %1503 = vst [vmem:[%s170_s13 + $0x10] sm:$0xff] %v1496_v32  ;;  %1505 = vst [vmem:[%s170_s13 + $0x20] sm:$0xff] %v1498_v34  ;;  %v1497_v40 = vmax.f32 %v1490_v35, 0.0  ;;  %v1499_v41 = vmax.f32 %v1492_v36, 0.0 }
 0x182   : > { %1501 = vst [vmem:[%s170_s13] sm:$0xff] %v1494_v38  ;;  %v1495_v42 = vmax.f32 %v1488_v0, 0.0 }
 0x183   : > { %1504 = vst [vmem:[%s170_s13 + $0x18] sm:$0xff] %v1497_v40  ;;  %1506 = vst [vmem:[%s170_s13 + $0x28] sm:$0xff] %v1499_v41 }
 0x184   : > { %1502 = vst [vmem:[%s170_s13 + $0x8] sm:$0xff] %v1495_v42 }
 0x185 PF: > { %s13_s12 = sadd.s32 1, %s2233_s12  }
 0x186   : > { %p10_p4 = scmp.ge.s32.totalorder %s13_s12, 4  }
 0x188   :  { %12 = sbr.rel (!%p10_p4) target bundleno = 1 (0x1), region = 70 }

// kernel: fine_tuned_inception_v3_forward.3
= control target key start
LH: loop header
LB: loop body
LE: loop exit
PB: predicated region body
PF: predicated region fallthrough
CT: control target
= control target key end

     0   :  { %s2316_s12 = smov 0   ;;  %s2698_s0 = inlined_call_operand.vmem [shape: f32[2,320,128], index: 0, kind: input, shape index: {}]   ;;  %s2699_s1 = inlined_call_operand.vmem [shape: bf16[9,128,128], index: 1, kind: input, shape index: {}]   ;;  %s2700_s2 = inlined_call_operand.vmem [shape: f32[1,128], index: 2, kind: input, shape index: {}]   ;;  %s2701_s3 = inlined_call_operand.vmem [shape: f32[2,64,128], index: 3, kind: output, shape index: {}]  }
   0x1 LB: > { %s1591_s13 = sadd.s32 4294967295, %s2294_s12   ;;  %p1595_p0 = scmp.ge.s32.totalorder %s2294_s12, 1  ;;  %s2294_s12 = sphi %s2316_s12, %s13_s12  }
   0x2   : > { %p137_p1 = scmp.lt.s32.totalorder %s2294_s12, 3 }
   0x4   : > { %p138_p2 = pnand %p1595_p0, %p137_p1 }
   0x5   : > { %v2216_v0 = vld [vmem:[%s2699_s1 + $0x40] sm:$0xff] (!%p138_p2)   ;;  %p161_p3 = scmp.lt.s32.totalorder (!%p138_p2), %s1591_s13, 1  ;;  %v2218_v2 = vld [vmem:[%s2699_s1 + $0x48] sm:$0xff] (!%p138_p2)   ;;  %v2220_v4 = vld [vmem:[%s2699_s1 + $0x50] sm:$0xff] (!%p138_p2)  }
   0x6   : > { %141 = sbr.rel (%p138_p2) target bundleno = 389 (0x185), region = 32  ;;  %v2217_v1 = vld [vmem:[%s2699_s1 + $0x100] sm:$0xff] (!%p138_p2)   ;;  %1911 = vmatprep.subr.bf16.mxu1 (!%p138_p2), %v2216_v0  ;;  %v2219_v3 = vld [vmem:[%s2699_s1 + $0x108] sm:$0xff] (!%p138_p2)   ;;  %v2221_v5 = vld [vmem:[%s2699_s1 + $0x110] sm:$0xff] (!%p138_p2)  }
   0x7   : > { %2007 = vmatprep.subr.bf16.mxu0 (!%p138_p2), %v2217_v1  ;;  %1912 = vmatpush3.bf16.msra.mxu1 (!%p138_p2), %v2216_v0  ;;  %v2222_v6 = vld [vmem:[%s2699_s1 + $0x58] sm:$0xff] (!%p138_p2)   ;;  %v2224_v8 = vld [vmem:[%s2699_s1 + $0x60] sm:$0xff] (!%p138_p2)   ;;  %v2226_v10 = vld [vmem:[%s2699_s1 + $0x68] sm:$0xff] (!%p138_p2)  }
   0x8   : > { %2008 = vmatpush3.bf16.msra.mxu0 (!%p138_p2), %v2217_v1  ;;  %1913 = vmatprep.subr.bf16.mxu1 (!%p138_p2), %v2218_v2  ;;  %v2223_v7 = vld [vmem:[%s2699_s1 + $0x118] sm:$0xff] (!%p138_p2)   ;;  %v2225_v9 = vld [vmem:[%s2699_s1 + $0x120] sm:$0xff] (!%p138_p2)   ;;  %v2227_v13 = vld [vmem:[%s2699_s1 + $0x128] sm:$0xff] (!%p138_p2)  }
   0x9   : > { %2009 = vmatprep.subr.bf16.mxu0 (!%p138_p2), %v2219_v3  ;;  %v2228_v19 = vld [vmem:[%s2699_s1 + $0x70] sm:$0xff] (!%p138_p2)   ;;  %v2230_v22 = vld [vmem:[%s2699_s1 + $0x78] sm:$0xff] (!%p138_p2)   ;;  %v2232_v24 = vld [vmem:[%s2699_s1] sm:$0xff] (!%p138_p2)  }
   0xa   : > { %v2229_v21 = vld [vmem:[%s2699_s1 + $0x130] sm:$0xff] (!%p138_p2)   ;;  %v2231_v23 = vld [vmem:[%s2699_s1 + $0x138] sm:$0xff] (!%p138_p2)   ;;  %v2233_v28 = vld [vmem:[%s2699_s1 + $0x140] sm:$0xff] (!%p138_p2)  }
   0xb   : > { %1914 = vmatpush3.bf16.msra.mxu1 (!%p138_p2), %v2218_v2  ;;  %v2234_v34 = vld [vmem:[%s2699_s1 + $0x8] sm:$0xff] (!%p138_p2)   ;;  %v2236_v39 = vld [vmem:[%s2699_s1 + $0x10] sm:$0xff] (!%p138_p2)   ;;  %v2238_v53 = vld [vmem:[%s2699_s1 + $0x18] sm:$0xff] (!%p138_p2)  }
   0xc   : > { %2010 = vmatpush3.bf16.msra.mxu0 (!%p138_p2), %v2219_v3  ;;  %1915 = vmatprep.subr.bf16.mxu1 (!%p138_p2), %v2220_v4  ;;  %v2235_v37 = vld [vmem:[%s2699_s1 + $0x148] sm:$0xff] (!%p138_p2)   ;;  %v2237_v46 = vld [vmem:[%s2699_s1 + $0x150] sm:$0xff] (!%p138_p2)   ;;  %v2239_v54 = vld [vmem:[%s2699_s1 + $0x158] sm:$0xff] (!%p138_p2)  }
   0xd   : > { %s2703_s13 = smov (!%p161_p3, %s1591_s13), 1  ;;  %2011 = vmatprep.subr.bf16.mxu0 %v2221_v5  ;;  %v2240_v57 = vld [vmem:[%s2699_s1 + $0x20] sm:$0xff]   ;;  %v2242_v59 = vld [vmem:[%s2699_s1 + $0x28] sm:$0xff]   ;;  %v2244_v61 = vld [vmem:[%s2699_s1 + $0x30] sm:$0xff]  }
   0xe   : > { %s2207_s30 = smul.u32 320, %s2703_s13  ;;  %v2241_v58 = vld [vmem:[%s2699_s1 + $0x160] sm:$0xff]   ;;  %v2243_v60 = vld [vmem:[%s2699_s1 + $0x168] sm:$0xff]   ;;  %v2245_v62 = vld [vmem:[%s2699_s1 + $0x170] sm:$0xff]   ;;  %s1802_s18 = sshll.u32 %s2703_s13, 6 }
   0xf   : > { %1916 = vmatpush3.bf16.msra.mxu1 %v2220_v4  ;;  %v2246_v63 = vld [vmem:[%s2699_s1 + $0x38] sm:$0xff]   ;;  %v2248_v1 = vld [vmem:[%s2699_s1 + $0x80] sm:$0xff]   ;;  %s170_s21 = scalar_lea.vmem %s2701_s3, %s1802_s18 }
  0x10   : > { %2012 = vmatpush3.bf16.msra.mxu0 %v2221_v5  ;;  %1917 = vmatprep.subr.bf16.mxu1 %v2222_v6  ;;  %s2360_s10 = scalar_lea.vmem %s2698_s0, %s2207_s30  ;;  %v2247_v0 = vld [vmem:[%s2699_s1 + $0x178] sm:$0xff]  }
  0x11   : > { %2013 = vmatprep.subr.bf16.mxu0 %v2223_v7  ;;  %v200_v11 = vld [vmem:[%s2360_s10 + $0x50] sm:$0xff]  ;;  %v2367_v12 = vld [vmem:[%s2360_s10 + $0x58] sm:$0xff]  ;;  %v2376_v18 = vld [vmem:[%s2360_s10 + $0x60] sm:$0xff] }
  0x12   : > { %v208_v14 = vpack.c.bf16 %v2367_v12, %v200_v11  ;;  %v755_v15 = vld [vmem:[%s2360_s10 + $0xf0] sm:$0xff]  ;;  %v756_v16 = vld [vmem:[%s2360_s10 + $0xf8] sm:$0xff]  ;;  %v1213_v20 = vpack.c.bf16 %v2376_v18, %v2367_v12  ;;  %v2396_v25 = vld [vmem:[%s2360_s10 + $0x68] sm:$0xff] }
  0x13   : > { %1918 = vmatpush3.bf16.msra.mxu1 %v2222_v6  ;;  %v763_v17 = vpack.c.bf16 %v756_v16, %v755_v15  ;;  %v757_v26 = vld [vmem:[%s2360_s10 + $0x100] sm:$0xff]  ;;  %v758_v27 = vld [vmem:[%s2360_s10 + $0x108] sm:$0xff]  ;;  %v209_v29 = vpack.c.bf16 %v2396_v25, %v2376_v18  ;;  %v2406_v30 = vld [vmem:[%s2360_s10 + $0x70] sm:$0xff] }
  0x14   : > { %2014 = vmatpush3.bf16.msra.mxu0 %v2223_v7  ;;  %1919 = vmatprep.subr.bf16.mxu1 %v2224_v8  ;;  %v764_v31 = vpack.c.bf16 %v758_v27, %v757_v26  ;;  %v2409_v32 = vld [vmem:[%s2360_s10 + $0x78] sm:$0xff]  ;;  %v1214_v33 = vpack.c.bf16 %v2406_v30, %v2396_v25  ;;  %v759_v35 = vld [vmem:[%s2360_s10 + $0x110] sm:$0xff]  ;;  %v2427_v41 = vld [vmem:[%s2360_s10 + $0x80] sm:$0xff] }
  0x15   : > { %2015 = vmatprep.subr.bf16.mxu0 %v2225_v9  ;;  %1927 = vmatprep.mubr.bf16.mxu1 %v208_v14  ;;  %v760_v36 = vld [vmem:[%s2360_s10 + $0x118] sm:$0xff]  ;;  %v210_v38 = vpack.c.bf16 %v2409_v32, %v2406_v30  ;;  %v2430_v42 = vld [vmem:[%s2360_s10 + $0x88] sm:$0xff]  ;;  %v761_v43 = vld [vmem:[%s2360_s10 + $0x120] sm:$0xff]  ;;  %v1215_v44 = vpack.c.bf16 %v2427_v41, %v2409_v32 }
  0x16   : > { %2023 = vmatprep.mubr.bf16.mxu0 %v763_v17  ;;  %v765_v40 = vpack.c.bf16 %v760_v36, %v759_v35  ;;  %v762_v45 = vld [vmem:[%s2360_s10 + $0x128] sm:$0xff]  ;;  %v172_v47 = vld [vmem:[%s2360_s10] sm:$0xff]  ;;  %v211_v48 = vpack.c.bf16 %v2430_v42, %v2427_v41  ;;  %v174_v2 = vld [vmem:[%s2360_s10 + $0x10] sm:$0xff] }
  0x17   : > { %1920 = vmatpush3.bf16.msra.mxu1 %v2224_v8  ;;  %v2443_v49 = vld [vmem:[%s2360_s10 + $0x8] sm:$0xff]  ;;  %v766_v50 = vpack.c.bf16 %v762_v45, %v761_v43  ;;  %v2483_v3 = vld [vmem:[%s2360_s10 + $0x18] sm:$0xff]  ;;  %v2249_v6 = vld [vmem:[%s2699_s1 + $0x180] sm:$0xff]  }
  0x18   : > { %2016 = vmatpush3.bf16.msra.mxu0 %v2225_v9  ;;  %1921 = vmatprep.subr.bf16.mxu1 %v2226_v10  ;;  %v905_v51 = vld [vmem:[%s2360_s10 + $0xa1] sm:$0xff]  ;;  %v906_v52 = vld [vmem:[%s2360_s10 + $0xa9] sm:$0xff]  ;;  %v180_v55 = vpack.c.bf16 %v2443_v49, %v172_v47  ;;  %v907_v4 = vld [vmem:[%s2360_s10 + $0xb1] sm:$0xff]  ;;  %v181_v9 = vpack.c.bf16 %v2483_v3, %v174_v2 }
  0x19   : > { %2017 = vmatprep.subr.bf16.mxu0 %v2227_v13  ;;  %v913_v56 = vpack.c.bf16 %v906_v52, %v905_v51  ;;  %v908_v5 = vld [vmem:[%s2360_s10 + $0xb9] sm:$0xff]  ;;  %v2494_v8 = vld [vmem:[%s2360_s10 + $0x28] sm:$0xff]  ;;  %v2508_v17 = vld [vmem:[%s2360_s10 + $0x30] sm:$0xff] }
  0x1a   : > { %v2491_v7 = vld [vmem:[%s2360_s10 + $0x20] sm:$0xff]  ;;  %v910_v14 = vld [vmem:[%s2360_s10 + $0xc9] sm:$0xff]  ;;  %v2255_v35 = vld [vmem:[%s2699_s1 + $0x198] sm:$0xff]  }
  0x1b   : > { %1922 = vmatpush3.bf16.msra.mxu1 %v2226_v10  ;;  %v2250_v10 = vld [vmem:[%s2699_s1 + $0x88] sm:$0xff]   ;;  %v182_v16 = vpack.c.bf16 %v2494_v8, %v2491_v7  ;;  %v912_v26 = vld [vmem:[%s2360_s10 + $0xd9] sm:$0xff]  ;;  %v2260_v45 = vld [vmem:[%s2699_s1 + $0xb0] sm:$0xff]  }
  0x1c   : > { %2018 = vmatpush3.bf16.msra.mxu0 %v2227_v13  ;;  %1923 = vmatprep.subr.bf16.mxu1 %v2228_v19  ;;  %v909_v11 = vld [vmem:[%s2360_s10 + $0xc1] sm:$0xff]  ;;  %v914_v13 = vpack.c.bf16 %v908_v5, %v907_v4  ;;  %v2262_v47 = vld [vmem:[%s2699_s1 + $0xb8] sm:$0xff]   ;;  %v2276_v12 = vld [vmem:[%s2699_s1 + $0xf0] sm:$0xff]  }
  0x1d   : > { %2019 = vmatprep.subr.bf16.mxu0 %v2229_v21  ;;  %v2251_v15 = vld [vmem:[%s2699_s1 + $0x188] sm:$0xff]   ;;  %v2264_v51 = vld [vmem:[%s2699_s1 + $0xc0] sm:$0xff]   ;;  %v2277_v18 = vld [vmem:[%s2699_s1 + $0x1f0] sm:$0xff]  }
  0x1e   : > { %v455_v27 = vld [vmem:[%s2360_s10 + $0x1] sm:$0xff]  ;;  %v2283_v30 = vld [vmem:[%s2699_s1 + $0x218] sm:$0xff]  }
  0x1f   : > { %1924 = vmatpush3.bf16.msra.mxu1 %v2228_v19  ;;  %v2252_v19 = vld [vmem:[%s2699_s1 + $0x90] sm:$0xff]   ;;  %v2259_v43 = vld [vmem:[%s2699_s1 + $0x1a8] sm:$0xff]   ;;  %v2265_v52 = vld [vmem:[%s2699_s1 + $0x1c0] sm:$0xff]  }
  0x20   : > { %2020 = vmatpush3.bf16.msra.mxu0 %v2229_v21  ;;  %1925 = vmatprep.subr.bf16.mxu1 %v2230_v22  ;;  %v915_v21 = vpack.c.bf16 %v910_v14, %v909_v11  ;;  %v606_v4 = vld [vmem:[%s2360_s10 + $0xa8] sm:$0xff]  ;;  %v2279_v14 = vld [vmem:[%s2699_s1 + $0x1f8] sm:$0xff]   ;;  %v2284_v32 = vld [vmem:[%s2699_s1 + $0x220] sm:$0xff]  }
  0x21   : > { %2021 = vmatprep.subr.bf16.mxu0 %v2231_v23  ;;  %v2274_v11 = vld [vmem:[%s2699_s1 + $0xe8] sm:$0xff]  }
  0x22   : > { %v2285_v41 = vld [vmem:[%s2699_s1 + $0x228] sm:$0xff]  }
  0x23   : > { %1926 = vmatpush3.bf16.msra.mxu1 %v2230_v22  ;;  %v2514_v22 = vld [vmem:[%s2360_s10 + $0x38] sm:$0xff] }
  0x24   : > { %2022 = vmatpush3.bf16.msra.mxu0 %v2231_v23  ;;  %1935 = vmatprep.subr.bf16.mxu1 %v2232_v24  ;;  %v2253_v23 = vld [vmem:[%s2699_s1 + $0x190] sm:$0xff]  }
  0x25   : > { %2031 = vmatprep.subr.bf16.mxu0 %v2233_v28 }
  0x26   : > { %1928 = vmatmul.mubr.bf16.vlgmr.msra.gmra.mrb[0].mxu1 %v209_v29  ;;  %v2525_v29 = vld [vmem:[%s2360_s10 + $0x9] sm:$0xff] }
  0x27   : > { %1936 = vmatpush3.bf16.msra.mxu1 %v2232_v24  ;;  %2024 = vmatmul.mubr.bf16.vlgmr.msra.gmra.mrb[0].mxu0 %v764_v31  ;;  %v911_v24 = vld [vmem:[%s2360_s10 + $0xd1] sm:$0xff]  ;;  %v463_v36 = vpack.c.bf16 %v2525_v29, %v455_v27 }
  0x28   : > { %2032 = vmatpush3.bf16.msra.mxu0 %v2233_v28  ;;  %1937 = vmatprep.subr.bf16.mxu1 %v2234_v34  ;;  %v183_v28 = vpack.c.bf16 %v2514_v22, %v2508_v17  ;;  %v916_v31 = vpack.c.bf16 %v912_v26, %v911_v24  ;;  %v611_v26 = vld [vmem:[%s2360_s10 + $0xd0] sm:$0xff]  ;;  %v612_v27 = vld [vmem:[%s2360_s10 + $0xd8] sm:$0xff] }
  0x29   : > { %2033 = vmatprep.subr.bf16.mxu0 %v2235_v37  ;;  %1931 = vmatprep.mubr.bf16.mxu1 %v210_v38  ;;  %v2256_v38 = vld [vmem:[%s2699_s1 + $0xa0] sm:$0xff]  }
  0x2a   : > { %2027 = vmatprep.mubr.bf16.mxu0 %v765_v40  ;;  %v2258_v40 = vld [vmem:[%s2699_s1 + $0xa8] sm:$0xff]  }
  0x2b   : > { %1938 = vmatpush3.bf16.msra.mxu1 %v2234_v34  ;;  %v2254_v34 = vld [vmem:[%s2699_s1 + $0x98] sm:$0xff]  }
  0x2c   : > { %2034 = vmatpush3.bf16.msra.mxu0 %v2235_v37  ;;  %1939 = vmatprep.subr.bf16.mxu1 %v2236_v39  ;;  %v1063_v37 = vpack.c.bf16 %v174_v2, %v2443_v49  ;;  %v2560_v49 = vld [vmem:[%s2360_s10 + $0x11] sm:$0xff] }
  0x2d   : > { %2035 = vmatprep.subr.bf16.mxu0 %v2237_v46 }
  0x2e   : > { %1932 = vmatmul.mubr.bf16.gmra.mrb[4].mxu1 %v211_v48  ;;  %v2263_v48 = vld [vmem:[%s2699_s1 + $0x1b8] sm:$0xff]  }
  0x2f   : > { %1940 = vmatpush3.bf16.msra.mxu1 %v2236_v39  ;;  %2028 = vmatmul.mubr.bf16.gmra.mrb[4].mxu0 %v766_v50  ;;  %v2257_v39 = vld [vmem:[%s2699_s1 + $0x1a0] sm:$0xff]  }
  0x30   : > { %2036 = vmatpush3.bf16.msra.mxu0 %v2237_v46  ;;  %1941 = vmatprep.subr.bf16.mxu1 %v2238_v53  ;;  %v2261_v46 = vld [vmem:[%s2699_s1 + $0x1b0] sm:$0xff]   ;;  %v2563_v50 = vld [vmem:[%s2360_s10 + $0x19] sm:$0xff] }
  0x31   : > { %2037 = vmatprep.subr.bf16.mxu0 %v2239_v54  ;;  %1951 = vmatprep.mubr.bf16.mxu1 %v180_v55  ;;  %v2577_v55 = vld [vmem:[%s2360_s10 + $0x29] sm:$0xff] }
  0x32   : > { %2047 = vmatprep.mubr.bf16.mxu0 %v913_v56  ;;  %v1064_v56 = vpack.c.bf16 %v2491_v7, %v2483_v3  ;;  %v605_v3 = vld [vmem:[%s2360_s10 + $0xa0] sm:$0xff]  ;;  %v2271_v7 = vld [vmem:[%s2699_s1 + $0x1d8] sm:$0xff]  }
  0x33   : > { %1942 = vmatpush3.bf16.msra.mxu1 %v2238_v53  ;;  %v464_v53 = vpack.c.bf16 %v2563_v50, %v2560_v49 }
  0x34   : > { %2038 = vmatpush3.bf16.msra.mxu0 %v2239_v54  ;;  %1943 = vmatprep.subr.bf16.mxu1 %v2240_v57  ;;  %v2574_v54 = vld [vmem:[%s2360_s10 + $0x21] sm:$0xff] }
  0x35   : > { %2039 = vmatprep.subr.bf16.mxu0 %v2241_v58 }
  0x37   : > { %1944 = vmatpush3.bf16.msra.mxu1 %v2240_v57  ;;  %v2266_v57 = vld [vmem:[%s2699_s1 + $0xc8] sm:$0xff]  }
  0x38   : > { %2040 = vmatpush3.bf16.msra.mxu0 %v2241_v58  ;;  %1945 = vmatprep.subr.bf16.mxu1 %v2242_v59  ;;  %v2267_v58 = vld [vmem:[%s2699_s1 + $0x1c8] sm:$0xff]  }
  0x39   : > { %2041 = vmatprep.subr.bf16.mxu0 %v2243_v60 }
  0x3b   : > { %1946 = vmatpush3.bf16.msra.mxu1 %v2242_v59  ;;  %v465_v59 = vpack.c.bf16 %v2577_v55, %v2574_v54 }
  0x3c   : > { %2042 = vmatpush3.bf16.msra.mxu0 %v2243_v60  ;;  %1947 = vmatprep.subr.bf16.mxu1 %v2244_v61  ;;  %v1065_v60 = vpack.c.bf16 %v2508_v17, %v2494_v8  ;;  %v613_v8 = vpack.c.bf16 %v606_v4, %v605_v3  ;;  %v2280_v17 = vld [vmem:[%s2699_s1 + $0x200] sm:$0xff]  }
  0x3d   : > { %2043 = vmatprep.subr.bf16.mxu0 %v2245_v62 }
  0x3f   : > { %1948 = vmatpush3.bf16.msra.mxu1 %v2244_v61  ;;  %v2592_v61 = vld [vmem:[%s2360_s10 + $0x31] sm:$0xff] }
  0x40   : > { %2044 = vmatpush3.bf16.msra.mxu0 %v2245_v62  ;;  %1949 = vmatprep.subr.bf16.mxu1 %v2246_v63  ;;  %v2595_v62 = vld [vmem:[%s2360_s10 + $0x39] sm:$0xff] }
  0x41   : > { %2045 = vmatprep.subr.bf16.mxu0 %v2247_v0  ;;  %v466_v2 = vpack.c.bf16 %v2595_v62, %v2592_v61 }
  0x43   : > { %1950 = vmatpush3.bf16.msra.mxu1 %v2246_v63  ;;  %v2268_v63 = vld [vmem:[%s2699_s1 + $0xd0] sm:$0xff]  }
  0x44   : > { %2046 = vmatpush3.bf16.msra.mxu0 %v2247_v0  ;;  %1959 = vmatprep.subr.bf16.mxu1 %v2248_v1  ;;  %v1062_v0 = vld [vmem:[%s2360_s10 + $0x40] sm:$0xff] }
  0x45   : > { %2055 = vmatprep.subr.bf16.mxu0 %v2249_v6  ;;  %v1066_v5 = vpack.c.bf16 %v1062_v0, %v2514_v22  ;;  %v610_v22 = vld [vmem:[%s2360_s10 + $0xc8] sm:$0xff] }
  0x46   : > { %1952 = vmatmul.mubr.bf16.vlgmr.msra.gmra.mrb[0].mxu1 %v181_v9  ;;  %v2272_v9 = vld [vmem:[%s2699_s1 + $0xe0] sm:$0xff]  }
  0x47   : > { %1960 = vmatpush3.bf16.msra.mxu1 %v2248_v1  ;;  %2048 = vmatmul.mubr.bf16.vlgmr.msra.gmra.mrb[0].mxu0 %v914_v13  ;;  %v2269_v1 = vld [vmem:[%s2699_s1 + $0x1d0] sm:$0xff]   ;;  %v2275_v13 = vld [vmem:[%s2699_s1 + $0x1e8] sm:$0xff]  }
  0x48   : > { %2056 = vmatpush3.bf16.msra.mxu0 %v2249_v6  ;;  %1961 = vmatprep.subr.bf16.mxu1 %v2250_v10  ;;  %v2270_v6 = vld [vmem:[%s2699_s1 + $0xd8] sm:$0xff]  }
  0x49   : > { %2057 = vmatprep.subr.bf16.mxu0 %v2251_v15  ;;  %1955 = vmatprep.mubr.bf16.mxu1 %v182_v16  ;;  %v608_v16 = vld [vmem:[%s2360_s10 + $0xb8] sm:$0xff] }
  0x4a   : > { %2051 = vmatprep.mubr.bf16.mxu0 %v915_v21  ;;  %v609_v21 = vld [vmem:[%s2360_s10 + $0xc0] sm:$0xff] }
  0x4b   : > { %1962 = vmatpush3.bf16.msra.mxu1 %v2250_v10  ;;  %v2273_v10 = vld [vmem:[%s2699_s1 + $0x1e0] sm:$0xff]   ;;  %v615_v24 = vpack.c.bf16 %v610_v22, %v609_v21 }
  0x4c   : > { %2058 = vmatpush3.bf16.msra.mxu0 %v2251_v15  ;;  %1963 = vmatprep.subr.bf16.mxu1 %v2252_v19  ;;  %v607_v15 = vld [vmem:[%s2360_s10 + $0xb0] sm:$0xff] }
  0x4d   : > { %2059 = vmatprep.subr.bf16.mxu0 %v2253_v23 }
  0x4e   : > { %1956 = vmatmul.mubr.bf16.gmra.mrb[4].mxu1 %v183_v28  ;;  %v1212_v28 = vld [vmem:[%s2360_s10 + $0x90] sm:$0xff] }
  0x4f   : > { %1964 = vmatpush3.bf16.msra.mxu1 %v2252_v19  ;;  %2052 = vmatmul.mubr.bf16.gmra.mrb[4].mxu0 %v916_v31  ;;  %v614_v19 = vpack.c.bf16 %v608_v16, %v607_v15  ;;  %v2282_v31 = vld [vmem:[%s2699_s1 + $0x210] sm:$0xff]   ;;  %v1216_v25 = vpack.c.bf16 %v1212_v28, %v2430_v42 }
  0x50   : > { %2060 = vmatpush3.bf16.msra.mxu0 %v2253_v23  ;;  %1965 = vmatprep.subr.bf16.mxu1 %v2254_v34  ;;  %v2281_v23 = vld [vmem:[%s2699_s1 + $0x208] sm:$0xff]   ;;  %v2286_v42 = vld [vmem:[%s2699_s1 + $0x230] sm:$0xff]  }
  0x51   : > { %2061 = vmatprep.subr.bf16.mxu0 %v2255_v35  ;;  %1975 = vmatprep.mubr.bf16.mxu1 %v463_v36 }
  0x52   : > { %2071 = vmatprep.mubr.bf16.mxu0 %v1063_v37  ;;  %v1364_v37 = vpack.c.bf16 %v2574_v54, %v2563_v50  ;;  %v1799_v54 = vld [vmem:[%s2700_s2] ss:$0 sm:$0xff] }
  0x53   : > { %1966 = vmatpush3.bf16.msra.mxu1 %v2254_v34  ;;  %v616_v34 = vpack.c.bf16 %v612_v27, %v611_v26 }
  0x54   : > { %2062 = vmatpush3.bf16.msra.mxu0 %v2255_v35  ;;  %1967 = vmatprep.subr.bf16.mxu1 %v2256_v38  ;;  %v1365_v35 = vpack.c.bf16 %v2592_v61, %v2577_v55 }
  0x55   : > { %2063 = vmatprep.subr.bf16.mxu0 %v2257_v39 }
  0x57   : > { %1968 = vmatpush3.bf16.msra.mxu1 %v2256_v38 }
  0x58   : > { %2064 = vmatpush3.bf16.msra.mxu0 %v2257_v39  ;;  %1969 = vmatprep.subr.bf16.mxu1 %v2258_v40 }
  0x59   : > { %2065 = vmatprep.subr.bf16.mxu0 %v2259_v43 }
  0x5b   : > { %1970 = vmatpush3.bf16.msra.mxu1 %v2258_v40 }
  0x5c   : > { %2066 = vmatpush3.bf16.msra.mxu0 %v2259_v43  ;;  %1971 = vmatprep.subr.bf16.mxu1 %v2260_v45 }
  0x5d   : > { %2067 = vmatprep.subr.bf16.mxu0 %v2261_v46 }
  0x5f   : > { %1972 = vmatpush3.bf16.msra.mxu1 %v2260_v45 }
  0x60   : > { %2068 = vmatpush3.bf16.msra.mxu0 %v2261_v46  ;;  %1973 = vmatprep.subr.bf16.mxu1 %v2262_v47 }
  0x61   : > { %2069 = vmatprep.subr.bf16.mxu0 %v2263_v48 }
  0x63   : > { %1974 = vmatpush3.bf16.msra.mxu1 %v2262_v47 }
  0x64   : > { %2070 = vmatpush3.bf16.msra.mxu0 %v2263_v48  ;;  %1983 = vmatprep.subr.bf16.mxu1 %v2264_v51 }
  0x65   : > { %2079 = vmatprep.subr.bf16.mxu0 %v2265_v52 }
  0x66   : > { %1976 = vmatmul.mubr.bf16.vlgmr.msra.gmra.mrb[0].mxu1 %v464_v53 }
  0x67   : > { %1984 = vmatpush3.bf16.msra.mxu1 %v2264_v51  ;;  %2072 = vmatmul.mubr.bf16.vlgmr.msra.gmra.mrb[0].mxu0 %v1064_v56 }
  0x68   : > { %2080 = vmatpush3.bf16.msra.mxu0 %v2265_v52  ;;  %1985 = vmatprep.subr.bf16.mxu1 %v2266_v57 }
  0x69   : > { %2081 = vmatprep.subr.bf16.mxu0 %v2267_v58  ;;  %1979 = vmatprep.mubr.bf16.mxu1 %v465_v59 }
  0x6a   : > { %2075 = vmatprep.mubr.bf16.mxu0 %v1065_v60 }
  0x6b   : > { %1986 = vmatpush3.bf16.msra.mxu1 %v2266_v57 }
  0x6c   : > { %2082 = vmatpush3.bf16.msra.mxu0 %v2267_v58  ;;  %1987 = vmatprep.subr.bf16.mxu1 %v2268_v63 }
  0x6d   : > { %2083 = vmatprep.subr.bf16.mxu0 %v2269_v1 }
  0x6e   : > { %1980 = vmatmul.mubr.bf16.gmra.mrb[4].mxu1 %v466_v2 }
  0x6f   : > { %1988 = vmatpush3.bf16.msra.mxu1 %v2268_v63  ;;  %2076 = vmatmul.mubr.bf16.gmra.mrb[4].mxu0 %v1066_v5 }
  0x70   : > { %2084 = vmatpush3.bf16.msra.mxu0 %v2269_v1  ;;  %1989 = vmatprep.subr.bf16.mxu1 %v2270_v6 }
  0x71   : > { %2085 = vmatprep.subr.bf16.mxu0 %v2271_v7  ;;  %1999 = vmatprep.mubr.bf16.mxu1 %v613_v8 }
  0x72   : > { %2095 = vmatprep.mubr.bf16.mxu0 %v1213_v20  ;;  %v2278_v20 = vld [vmem:[%s2699_s1 + $0xf8] sm:$0xff]  }
  0x73   : > { %1990 = vmatpush3.bf16.msra.mxu1 %v2270_v6 }
  0x74   : > { %2086 = vmatpush3.bf16.msra.mxu0 %v2271_v7  ;;  %1991 = vmatprep.subr.bf16.mxu1 %v2272_v9 }
  0x75   : > { %2087 = vmatprep.subr.bf16.mxu0 %v2273_v10 }
  0x77   : > { %1992 = vmatpush3.bf16.msra.mxu1 %v2272_v9 }
  0x78   : > { %2088 = vmatpush3.bf16.msra.mxu0 %v2273_v10  ;;  %1993 = vmatprep.subr.bf16.mxu1 %v2274_v11 }
  0x79   : > { %2089 = vmatprep.subr.bf16.mxu0 %v2275_v13 }
  0x7b   : > { %1994 = vmatpush3.bf16.msra.mxu1 %v2274_v11 }
  0x7c   : > { %2090 = vmatpush3.bf16.msra.mxu0 %v2275_v13  ;;  %1995 = vmatprep.subr.bf16.mxu1 %v2276_v12 }
  0x7d   : > { %2091 = vmatprep.subr.bf16.mxu0 %v2277_v18 }
  0x7f   : > { %1996 = vmatpush3.bf16.msra.mxu1 %v2276_v12 }
  0x80   : > { %2092 = vmatpush3.bf16.msra.mxu0 %v2277_v18  ;;  %1997 = vmatprep.subr.bf16.mxu1 %v2278_v20 }
  0x81   : > { %2093 = vmatprep.subr.bf16.mxu0 %v2279_v14 }
  0x83   : > { %1998 = vmatpush3.bf16.msra.mxu1 %v2278_v20 }
  0x84   : > { %2094 = vmatpush3.bf16.msra.mxu0 %v2279_v14  ;;  %2127 = vmatprep.subr.bf16.mxu1 %v2280_v17 }
  0x85   : > { %2103 = vmatprep.subr.bf16.mxu0 %v2280_v17 }
  0x86   : > { %2000 = vmatmul.mubr.bf16.vlgmr.msra.gmra.mrb[0].mxu1 %v614_v19 }
  0x87   : > { %2096 = vmatmul.mubr.bf16.vlgmr.msra.gmra.mrb[0].mxu0 %v1214_v33  ;;  %2135 = vmatpush3.bf16.msra.mxu1 %v2280_v17  ;;  %v1363_v33 = vpack.c.bf16 %v2560_v49, %v2525_v29  ;;  %v1362_v29 = vld [vmem:[%s2360_s10 + $0x41] sm:$0xff] }
  0x88   : > { %2104 = vmatpush3.bf16.msra.mxu0 %v2280_v17  ;;  %2128 = vmatprep.subr.bf16.mxu1 %v2281_v23  ;;  %v1366_v36 = vpack.c.bf16 %v1362_v29, %v2595_v62 }
  0x89   : > { %2105 = vmatprep.subr.bf16.mxu0 %v2281_v23  ;;  %2003 = vmatprep.mubr.bf16.mxu1 %v615_v24 }
  0x8a   : > { %2099 = vmatprep.mubr.bf16.mxu0 %v1215_v44  ;;  %v2287_v44 = vld [vmem:[%s2699_s1 + $0x238] sm:$0xff]  }
  0x8b   : > { %2136 = vmatpush3.bf16.msra.mxu1 %v2281_v23 }
  0x8c   : > { %2106 = vmatpush3.bf16.msra.mxu0 %v2281_v23  ;;  %2129 = vmatprep.subr.bf16.mxu1 %v2282_v31 }
  0x8d   : > { %2107 = vmatprep.subr.bf16.mxu0 %v2282_v31 }
  0x8e   : > { %2004 = vmatmul.mubr.bf16.gmra.mrb[4].mxu1 %v616_v34 }
  0x8f   : > { %2100 = vmatmul.mubr.bf16.gmra.mrb[4].mxu0 %v1216_v25  ;;  %2137 = vmatpush3.bf16.msra.mxu1 %v2282_v31 }
  0x90   : > { %2108 = vmatpush3.bf16.msra.mxu0 %v2282_v31  ;;  %2130 = vmatprep.subr.bf16.mxu1 %v2283_v30 }
  0x91   : > { %2109 = vmatprep.subr.bf16.mxu0 %v2283_v30  ;;  %2119 = vmatprep.mubr.bf16.mxu0 %v1363_v33 }
  0x92   : > { %2123 = vmatprep.mubr.bf16.mxu1 %v1365_v35 }
  0x93   : > { %2138 = vmatpush3.bf16.msra.mxu1 %v2283_v30 }
  0x94   : > { %2110 = vmatpush3.bf16.msra.mxu0 %v2283_v30  ;;  %2131 = vmatprep.subr.bf16.mxu1 %v2284_v32 }
  0x95   : > { %2111 = vmatprep.subr.bf16.mxu0 %v2284_v32 }
  0x97   : > { %2139 = vmatpush3.bf16.msra.mxu1 %v2284_v32 }
  0x98   : > { %2112 = vmatpush3.bf16.msra.mxu0 %v2284_v32  ;;  %2132 = vmatprep.subr.bf16.mxu1 %v2285_v41 }
  0x99   : > { %2113 = vmatprep.subr.bf16.mxu0 %v2285_v41 }
  0x9b   : > { %2140 = vmatpush3.bf16.msra.mxu1 %v2285_v41 }
  0x9c   : > { %2114 = vmatpush3.bf16.msra.mxu0 %v2285_v41  ;;  %2133 = vmatprep.subr.bf16.mxu1 %v2286_v42 }
  0x9d   : > { %2115 = vmatprep.subr.bf16.mxu0 %v2286_v42 }
  0x9f   : > { %2141 = vmatpush3.bf16.msra.mxu1 %v2286_v42 }
  0xa0   : > { %2116 = vmatpush3.bf16.msra.mxu0 %v2286_v42  ;;  %2134 = vmatprep.subr.bf16.mxu1 %v2287_v44 }
  0xa1   : > { %2117 = vmatprep.subr.bf16.mxu0 %v2287_v44 }
  0xa3   : > { %2142 = vmatpush3.bf16.msra.mxu1 %v2287_v44 }
  0xa4   : > { %2118 = vmatpush3.bf16.msra.mxu0 %v2287_v44 }
  0xa6   : > { %2124 = vmatmul.mubr.bf16.vlgmr.msra.gmra.mrb[8].mxu1 %v1366_v36 }
  0xa7   : > { %2120 = vmatmul.mubr.bf16.vlgmr.msra.gmra.mrb[0].mxu0 %v1364_v37 }
 0x159   : > { %v2001_v38 = vpop.f32.mrb[0].mxu1 }
 0x15a   : > { %v716_v39 = vpop.f32.mrb[1].mxu1 }
 0x15b   : > { %v2002_v40 = vpop.f32.mrb[2].mxu1 }
 0x15c   : > { %v719_v43 = vpop.f32.mrb[3].mxu1 }
 0x161   : > { %v2005_v45 = vpop.f32.mrb[4].mxu1 }
 0x162   : > { %v2101_v46 = vpop.f32.mrb[4].mxu0  ;;  %v732_v47 = vpop.f32.mrb[5].mxu1 }
 0x163   : > { %v2147_v48 = vadd.f32 %v2101_v46, %v2005_v45  ;;  %v1332_v49 = vpop.f32.mrb[5].mxu0  ;;  %v2006_v51 = vpop.f32.mrb[6].mxu1 }
 0x164   : > { %v2149_v52 = vadd.f32 %v1332_v49, %v732_v47  ;;  %v2102_v53 = vpop.f32.mrb[6].mxu0  ;;  %v735_v55 = vpop.f32.mrb[7].mxu1 }
 0x165   : > { %v2151_v56 = vadd.f32 %v2102_v53, %v2006_v51  ;;  %v1335_v57 = vpop.f32.mrb[7].mxu0 }
 0x166   : > { %v2153_v50 = vadd.f32 %v1335_v57, %v735_v55 }
 0x179   : > { %v2125_v58 = vpop.f32.mrb[8].mxu1 }
 0x17a   : > { %v2121_v59 = vpop.f32.mrb[0].mxu0  ;;  %v2148_v60 = vadd.f32 %v2147_v48, %v2125_v58  ;;  %v1482_v61 = vpop.f32.mrb[9].mxu1 }
 0x17b   : > { %v2143_v62 = vadd.f32 %v2121_v59, %v2001_v38  ;;  %v1466_v63 = vpop.f32.mrb[1].mxu0  ;;  %v2150_v0 = vadd.f32 %v2149_v52, %v1482_v61  ;;  %v2126_v1 = vpop.f32.mrb[10].mxu1 }
 0x17c   : > { %v1518_v2 = vadd.f32 %v2148_v60, %v1799_v54  ;;  %v2144_v3 = vadd.f32 %v1466_v63, %v716_v39  ;;  %v2122_v4 = vpop.f32.mrb[2].mxu0  ;;  %v2152_v5 = vadd.f32 %v2151_v56, %v2126_v1  ;;  %v1485_v6 = vpop.f32.mrb[11].mxu1 }
 0x17d   : > { %v1514_v7 = vadd.f32 %v2143_v62, %v1799_v54  ;;  %v1516_v8 = vadd.f32 %v2150_v0, %v1799_v54  ;;  %v2145_v9 = vadd.f32 %v2122_v4, %v2002_v40  ;;  %v1469_v10 = vpop.f32.mrb[3].mxu0  ;;  %v2154_v11 = vadd.f32 %v2153_v50, %v1485_v6 }
 0x17e   : > { %v1526_v13 = vmax.f32 %v1518_v2, 0.0  ;;  %v1512_v12 = vadd.f32 %v2144_v3, %v1799_v54  ;;  %v1519_v18 = vadd.f32 %v2152_v5, %v1799_v54  ;;  %v2146_v20 = vadd.f32 %v1469_v10, %v719_v43 }
 0x17f   : > { %v1522_v14 = vmax.f32 %v1514_v7, 0.0  ;;  %v1524_v15 = vmax.f32 %v1516_v8, 0.0  ;;  %v1515_v16 = vadd.f32 %v2145_v9, %v1799_v54  ;;  %v1517_v17 = vadd.f32 %v2154_v11, %v1799_v54 }
 0x180   : > { %1534 = vst [vmem:[%s170_s21 + $0x30] sm:$0xff] %v1526_v13  ;;  %v1520_v19 = vmax.f32 %v1512_v12, 0.0  ;;  %v1527_v21 = vmax.f32 %v1519_v18, 0.0  ;;  %v1513_v22 = vadd.f32 %v2146_v20, %v1799_v54 }
 0x181   : > { %1530 = vst [vmem:[%s170_s21 + $0x10] sm:$0xff] %v1522_v14  ;;  %1532 = vst [vmem:[%s170_s21 + $0x20] sm:$0xff] %v1524_v15  ;;  %v1523_v23 = vmax.f32 %v1515_v16, 0.0  ;;  %v1525_v24 = vmax.f32 %v1517_v17, 0.0 }
 0x182   : > { %1528 = vst [vmem:[%s170_s21] sm:$0xff] %v1520_v19  ;;  %1535 = vst [vmem:[%s170_s21 + $0x38] sm:$0xff] %v1527_v21  ;;  %v1521_v26 = vmax.f32 %v1513_v22, 0.0 }
 0x183   : > { %1531 = vst [vmem:[%s170_s21 + $0x18] sm:$0xff] %v1523_v23  ;;  %1533 = vst [vmem:[%s170_s21 + $0x28] sm:$0xff] %v1525_v24 }
 0x184   : > { %1529 = vst [vmem:[%s170_s21 + $0x8] sm:$0xff] %v1521_v26 }
 0x185 PF: > { %s13_s12 = sadd.s32 1, %s2294_s12  }
 0x186   : > { %p10_p4 = scmp.ge.s32.totalorder %s13_s12, 4  }
 0x188   :  { %12 = sbr.rel (!%p10_p4) target bundleno = 1 (0x1), region = 70 }

</bundles_post_ra>
